<compile_context>
chip_gen: v7x
topology: tpu7x:2x2x1
jax: 0.10.0
libtpu: 0.0.40
codegen_flags: <defaults>
</compile_context>

<pallas_src>
import functools

import jax
import jax.numpy as jnp
import numpy as np
from jax.experimental import pallas as pl
from jax.experimental.pallas import tpu as pltpu

_HIGHEST = jax.lax.Precision.HIGHEST


def _seal_dcm_kernel(seg_ref, nums_ref, mask_ref,
                     w1t_ref, w2t_ref, wot_ref, b12_ref, bo_ref,
                     wbd_ref, beta0_ref, rep_ref, sum_ref,
                     final_ref, latent_ref):
    f32 = jnp.float32
    dot = functools.partial(jnp.dot, preferred_element_type=f32, precision=_HIGHEST)

    # ---- MembershipModel: Linear+ReLU, Linear+ReLU, Linear, softmax(dim=1) ----
    seg = seg_ref[...]
    h1 = jnp.maximum(dot(seg, w1t_ref[...]) + b12_ref[0:1, :], 0.0)
    h2 = jnp.maximum(dot(h1, w2t_ref[...]) + b12_ref[1:2, :], 0.0)
    lm = dot(h2, wot_ref[...]) + bo_ref[...]
    lm = lm - jnp.max(lm, axis=1, keepdims=True)
    e = jnp.exp(lm)
    latent = e / jnp.sum(e, axis=1, keepdims=True)               # exact softmax over C lanes
    latent_ref[...] = latent.astype(latent_ref.dtype)

    # ---- DCM head, fully lane-dense on (TB, A*C) ----
    # logits[b, a*C + c] = nums[b, a, :] @ beta[c, 1:] + beta[c, 0]
    logits = dot(nums_ref[...], wbd_ref[...]) + beta0_ref[...]   # (TB, A*C) via block-diag beta
    masked = logits * mask_ref[...]                              # mask pre-expanded to (TB, A*C)
    probs = 0.5 * jnp.tanh(0.5 * masked) + 0.5                   # exact sigmoid, overflow-safe (EUP)
    lat_rep = dot(latent, rep_ref[...])                          # (TB, A*C): latent replicated per alt
    final = dot(probs * lat_rep, sum_ref[...])                   # (TB, A): class reduction on MXU
    final_ref[...] = jnp.clip(final, 1e-7, 1.0 - 1e-7).astype(final_ref.dtype)


def _chip_hints():
    """(physical_vmem_bytes, has_two_tensorcores) with robust fallbacks."""
    vmem_bytes = 64 * 1024 * 1024          # conservative default (v7x-sized)
    two_tc = False
    try:
        vmem_bytes = int(pltpu.get_tpu_info().vmem_capacity_bytes)
    except Exception:
        pass
    try:
        two_tc = "7" in jax.devices()[0].device_kind.lower()   # v7x: 2 TensorCores / device
    except Exception:
        pass
    return vmem_bytes, two_tc


def _pick_block_b(B, cap, prefer_split):
    """Largest multiple-of-8 divisor of B <= cap; on 2-TC chips prefer >= 2 grid steps."""
    if B <= 8:
        return B
    bb = min(B, cap)
    best = None
    while bb >= 8:
        if B % bb == 0 and bb % 8 == 0:
            best = bb
            break
        bb -= 1
    if best is None:
        return B
    if prefer_split and best == B:
        half = best // 2
        while half >= 8:
            if B % half == 0 and half % 8 == 0:
                return half
            half -= 1
    return best


def seal_dcm_forward(seg, nums, mask, params, *, intcpt=True, neg_beta=0,
                     block_b=None, interpret=False):
    """Fused SEAL_DCM forward.  Parameter transforms (negBeta constraint, transposes,
    block-diagonal beta, mask expansion) happen once in plain JAX; all per-sample matmuls,
    softmax, sigmoid and the latent-class mixture run inside the Pallas kernel."""
    w1, b1 = params["w1"], params["b1"]
    w2, b2 = params["w2"], params["b2"]
    wo, bo = params["wo"], params["bo"]
    beta = params["beta"]

    seg = seg.astype(jnp.float32)
    nums = nums.astype(jnp.float32)
    mask = mask.astype(jnp.float32)

    B, A, Fn = nums.shape
    C = beta.shape[0]
    H = w1.shape[0]
    S = seg.shape[1]
    AFn, AC = A * Fn, A * C

    if neg_beta > 0:   # constrain trailing coefficients to be <= 0
        beta = jnp.concatenate(
            [beta[:, :-neg_beta], -jax.nn.relu(-beta[:, -neg_beta:])], axis=1)
    if intcpt:
        beta0 = beta[:, 0:1].T.astype(jnp.float32)    # (1, C) intercept coefficients
        beta_t = beta[:, 1:].T.astype(jnp.float32)    # (Fn, C)
    else:
        beta0 = jnp.zeros((1, C), jnp.float32)
        beta_t = beta.T.astype(jnp.float32)           # (Fn, C)
    assert beta_t.shape[0] == Fn, "beta width must match numSize (+1 if intcpt)"

    # Block-diagonal beta: W[a*Fn+f, a*C+c] = beta_t[f, c]  -> one (B, A*Fn)@(A*Fn, A*C) matmul.
    wbd = jnp.einsum("ab,fc->afbc", jnp.eye(A, dtype=jnp.float32),
                     beta_t).reshape(AFn, AC)
    beta0_rep = jnp.tile(beta0, (1, A))                               # (1, A*C)
    rep = jnp.tile(jnp.eye(C, dtype=jnp.float32), (1, A))             # (C, A*C)
    summat = jnp.repeat(jnp.eye(A, dtype=jnp.float32), C, axis=0)     # (A*C, A)

    nums_flat = nums.reshape(B, AFn)          # free contiguous reshape, lane-dense stream
    mask_exp = jnp.repeat(mask, C, axis=1)    # (B, A*C)

    w1t = w1.T.astype(jnp.float32)            # (S, H)
    w2t = w2.T.astype(jnp.float32)            # (H, H)
    wot = wo.T.astype(jnp.float32)            # (H, C)
    b12 = jnp.stack([b1, b2], axis=0).astype(jnp.float32)   # (2, H)
    bo2 = bo.reshape(1, C).astype(jnp.float32)               # (1, C)

    vmem_phys, two_tc = _chip_hints()
    vmem_limit = int(min(96 * 1024 * 1024, max(32 * 1024 * 1024, (vmem_phys * 3) // 4)))

    if block_b is None:
        lanes = lambda n: -(-n // 128) * 128
        row_bytes = 4 * (lanes(S) + lanes(AFn) + lanes(AC) + lanes(A) + lanes(C))
        cap = max(8, min(4096, ((vmem_limit // 2) // (2 * row_bytes)) // 8 * 8))
        block_b = _pick_block_b(B, cap, prefer_split=two_tc)
    assert B % block_b == 0, "batch must be divisible by the batch tile"
    assert block_b == B or block_b % 8 == 0, "batch tile must be a multiple of 8"
    grid = (B // block_b,)

    const = lambda shape: pl.BlockSpec(shape, lambda i, _n=len(shape): (0,) * _n)
    in_specs = [
        pl.BlockSpec((block_b, S), lambda i: (i, 0)),        # seg
        pl.BlockSpec((block_b, AFn), lambda i: (i, 0)),      # nums (flattened, lane-dense)
        pl.BlockSpec((block_b, AC), lambda i: (i, 0)),       # mask expanded over classes
        const((S, H)), const((H, H)), const((H, C)),         # MLP weights (resident)
        const((2, H)), const((1, C)),                        # MLP biases
        const((AFn, AC)), const((1, AC)),                    # block-diag beta, intercept
        const((C, AC)), const((AC, A)),                      # latent-replicate / class-sum mats
    ]
    out_specs = [
        pl.BlockSpec((block_b, A), lambda i: (i, 0)),        # final_prob
        pl.BlockSpec((block_b, C), lambda i: (i, 0)),        # latent_classes
    ]
    out_shape = (
        jax.ShapeDtypeStruct((B, A), jnp.float32),
        jax.ShapeDtypeStruct((B, C), jnp.float32),
    )

    flops = int(2 * B * (S * H + H * H + H * C)
                + 2 * B * AFn * AC + 2 * B * C * AC + 2 * B * AC * A
                + 4 * B * AC)
    transcendentals = int(B * C + B * AC)
    bytes_accessed = int(4 * (B * (S + AFn + AC + A + C)
                              + S * H + H * H + H * C + 2 * H + C
                              + AFn * AC + AC + C * AC + AC * A))

    return pl.pallas_call(
        _seal_dcm_kernel,
        out_shape=out_shape,
        grid_spec=pltpu.PrefetchScalarGridSpec(
            num_scalar_prefetch=0,
            grid=grid,
            in_specs=in_specs,
            out_specs=out_specs,
        ),
        compiler_params=pltpu.CompilerParams(
            dimension_semantics=("parallel",),
            vmem_limit_bytes=vmem_limit,
        ),
        cost_estimate=pl.CostEstimate(
            flops=flops,
            transcendentals=transcendentals,
            bytes_accessed=bytes_accessed,
        ),
        interpret=interpret,
    )(seg, nums_flat, mask_exp, w1t, w2t, wot, b12, bo2, wbd, beta0_rep, rep, summat)


def ref_forward(seg, nums, mask, params, *, intcpt=True, neg_beta=0):
    """Pure-JAX reference mirroring the (intended) PyTorch forward."""
    hi = _HIGHEST
    h1 = jax.nn.relu(jnp.dot(seg, params["w1"].T, precision=hi) + params["b1"])
    h2 = jax.nn.relu(jnp.dot(h1, params["w2"].T, precision=hi) + params["b2"])
    latent = jax.nn.softmax(jnp.dot(h2, params["wo"].T, precision=hi) + params["bo"], axis=1)

    B, A, _ = nums.shape
    beta = params["beta"]
    if intcpt:
        nums = jnp.concatenate([jnp.ones((B, A, 1), nums.dtype), nums], axis=-1)
    if neg_beta > 0:
        beta = jnp.concatenate(
            [beta[:, :-neg_beta], -jax.nn.relu(-beta[:, -neg_beta:])], axis=1)
    logits = jnp.einsum("baf,cf->bac", nums, beta, precision=hi)
    probs = jax.nn.sigmoid(logits * mask[:, :, None])
    final = jnp.sum(latent[:, None, :] * probs, axis=2)
    return jnp.clip(final, 1e-7, 1.0 - 1e-7), latent


if __name__ == "__main__":
    # Shapes consistent with the module: SEAL_DCM(segSize=32, nClasses=2, numSize=7,
    # nnodes=32, intcpt=True), batch=64, nAlts=8.
    B, A = 64, 8
    segSize, numSize, nClasses, nnodes = 32, 7, 2, 32

    key = jax.random.PRNGKey(0)
    ks = jax.random.split(key, 10)
    params = {
        "w1": 0.1 * jax.random.normal(ks[0], (nnodes, segSize), jnp.float32),
        "b1": 0.1 * jax.random.normal(ks[1], (nnodes,), jnp.float32),
        "w2": 0.1 * jax.random.normal(ks[2], (nnodes, nnodes), jnp.float32),
        "b2": 0.1 * jax.random.normal(ks[3], (nnodes,), jnp.float32),
        "wo": 0.1 * jax.random.normal(ks[4], (nClasses, nnodes), jnp.float32),
        "bo": 0.1 * jax.random.normal(ks[5], (nClasses,), jnp.float32),
        "beta": jax.random.normal(ks[6], (nClasses, numSize + 1), jnp.float32),
    }
    seg = jax.random.normal(ks[7], (B, segSize), jnp.float32)
    nums = jax.random.normal(ks[8], (B, A, numSize), jnp.float32)
    mask = (jax.random.uniform(ks[9], (B, A)) < 0.7).astype(jnp.float32)

    # intcpt=True, negBeta=0
    final_prob, latent_classes = seal_dcm_forward(seg, nums, mask, params,
                                                  intcpt=True, neg_beta=0)
    jax.block_until_ready((final_prob, latent_classes))
    ref_final, ref_latent = ref_forward(seg, nums, mask, params, intcpt=True, neg_beta=0)
    assert final_prob.shape == (B, A) and latent_classes.shape == (B, nClasses)
    np.testing.assert_allclose(np.asarray(final_prob), np.asarray(ref_final),
                               rtol=1e-4, atol=1e-5)
    np.testing.assert_allclose(np.asarray(latent_classes), np.asarray(ref_latent),
                               rtol=1e-4, atol=1e-5)

    # intcpt=True, negBeta=2 (parameter-constraint path)
    fp2, lt2 = seal_dcm_forward(seg, nums, mask, params, intcpt=True, neg_beta=2)
    jax.block_until_ready((fp2, lt2))
    rf2, rl2 = ref_forward(seg, nums, mask, params, intcpt=True, neg_beta=2)
    np.testing.assert_allclose(np.asarray(fp2), np.asarray(rf2), rtol=1e-4, atol=1e-5)
    np.testing.assert_allclose(np.asarray(lt2), np.asarray(rl2), rtol=1e-4, atol=1e-5)

    print("KERNEL_OK")
</pallas_src>

<mosaic_0001>
module attributes {stable_mosaic.version = 11 : i64} {
  func.func @_seal_dcm_kernel(%arg0: i32, %arg1: memref<64x32xf32, #tpu.memory_space<vmem>>, %arg2: memref<64x56xf32, #tpu.memory_space<vmem>>, %arg3: memref<64x16xf32, #tpu.memory_space<vmem>>, %arg4: memref<32x32xf32, #tpu.memory_space<vmem>>, %arg5: memref<32x32xf32, #tpu.memory_space<vmem>>, %arg6: memref<32x2xf32, #tpu.memory_space<vmem>>, %arg7: memref<2x32xf32, #tpu.memory_space<vmem>>, %arg8: memref<1x2xf32, #tpu.memory_space<vmem>>, %arg9: memref<56x16xf32, #tpu.memory_space<vmem>>, %arg10: memref<1x16xf32, #tpu.memory_space<vmem>>, %arg11: memref<2x16xf32, #tpu.memory_space<vmem>>, %arg12: memref<16x8xf32, #tpu.memory_space<vmem>>, %arg13: memref<64x8xf32, #tpu.memory_space<vmem>>, %arg14: memref<64x2xf32, #tpu.memory_space<vmem>>) attributes {dimension_semantics = [#tpu.dimension_semantics<parallel>], iteration_bounds = array<i64: 1>, scalar_prefetch = 0 : i64, scratch_operands = 0 : i64, tpu.core_type = #tpu.core_type<tc>, window_params = [{transform_indices = @transform_0, window_bounds = array<i64: 64, 32>}, {transform_indices = @transform_1, window_bounds = array<i64: 64, 56>}, {transform_indices = @transform_2, window_bounds = array<i64: 64, 16>}, {pipeline_mode = #tpu.pipeline_mode<synchronous>, transform_indices = @transform_3, window_bounds = array<i64: 32, 32>}, {pipeline_mode = #tpu.pipeline_mode<synchronous>, transform_indices = @transform_4, window_bounds = array<i64: 32, 32>}, {pipeline_mode = #tpu.pipeline_mode<synchronous>, transform_indices = @transform_5, window_bounds = array<i64: 32, 2>}, {pipeline_mode = #tpu.pipeline_mode<synchronous>, transform_indices = @transform_6, window_bounds = array<i64: 2, 32>}, {pipeline_mode = #tpu.pipeline_mode<synchronous>, transform_indices = @transform_7, window_bounds = array<i64: 1, 2>}, {pipeline_mode = #tpu.pipeline_mode<synchronous>, transform_indices = @transform_8, window_bounds = array<i64: 56, 16>}, {pipeline_mode = #tpu.pipeline_mode<synchronous>, transform_indices = @transform_9, window_bounds = array<i64: 1, 16>}, {pipeline_mode = #tpu.pipeline_mode<synchronous>, transform_indices = @transform_10, window_bounds = array<i64: 2, 16>}, {pipeline_mode = #tpu.pipeline_mode<synchronous>, transform_indices = @transform_11, window_bounds = array<i64: 16, 8>}, {transform_indices = @transform_12, window_bounds = array<i64: 64, 8>}, {transform_indices = @transform_13, window_bounds = array<i64: 64, 2>}]} {
    %c0 = arith.constant 0 : index
    %c0_0 = arith.constant 0 : index
    %0 = vector.load %arg1[%c0, %c0_0] : memref<64x32xf32, #tpu.memory_space<vmem>>, vector<64x32xf32>
    %c0_1 = arith.constant 0 : index
    %c0_2 = arith.constant 0 : index
    %1 = vector.load %arg4[%c0_1, %c0_2] : memref<32x32xf32, #tpu.memory_space<vmem>>, vector<32x32xf32>
    %cst = arith.constant dense<0.000000e+00> : vector<64x32xf32>
    %2 = tpu.matmul %0, %1, %cst {dimension_numbers = #tpu.dot_dimension_numbers<[1], [0], [0], [1], [0, 0, 1, 1], [], []>, precision = #tpu.contract_precision<fp32>} : vector<64x32xf32>, vector<32x32xf32>, vector<64x32xf32> -> vector<64x32xf32>
    %c0_3 = arith.constant 0 : index
    %c0_4 = arith.constant 0 : index
    %3 = vector.load %arg7[%c0_3, %c0_4] : memref<2x32xf32, #tpu.memory_space<vmem>>, vector<1x32xf32>
    %4 = vector.broadcast %3 : vector<1x32xf32> to vector<64x32xf32>
    %5 = arith.addf %2, %4 : vector<64x32xf32>
    %cst_5 = arith.constant 0.000000e+00 : f32
    %6 = vector.broadcast %cst_5 : f32 to vector<64x32xf32>
    %7 = arith.maximumf %5, %6 : vector<64x32xf32>
    %c0_6 = arith.constant 0 : index
    %c0_7 = arith.constant 0 : index
    %8 = vector.load %arg5[%c0_6, %c0_7] : memref<32x32xf32, #tpu.memory_space<vmem>>, vector<32x32xf32>
    %cst_8 = arith.constant dense<0.000000e+00> : vector<64x32xf32>
    %9 = tpu.matmul %7, %8, %cst_8 {dimension_numbers = #tpu.dot_dimension_numbers<[1], [0], [0], [1], [0, 0, 1, 1], [], []>, precision = #tpu.contract_precision<fp32>} : vector<64x32xf32>, vector<32x32xf32>, vector<64x32xf32> -> vector<64x32xf32>
    %c1 = arith.constant 1 : index
    %c0_9 = arith.constant 0 : index
    %10 = vector.load %arg7[%c1, %c0_9] : memref<2x32xf32, #tpu.memory_space<vmem>>, vector<1x32xf32>
    %11 = vector.broadcast %10 : vector<1x32xf32> to vector<64x32xf32>
    %12 = arith.addf %9, %11 : vector<64x32xf32>
    %cst_10 = arith.constant 0.000000e+00 : f32
    %13 = vector.broadcast %cst_10 : f32 to vector<64x32xf32>
    %14 = arith.maximumf %12, %13 : vector<64x32xf32>
    %c0_11 = arith.constant 0 : index
    %c0_12 = arith.constant 0 : index
    %15 = vector.load %arg6[%c0_11, %c0_12] : memref<32x2xf32, #tpu.memory_space<vmem>>, vector<32x2xf32>
    %cst_13 = arith.constant dense<0.000000e+00> : vector<64x2xf32>
    %16 = tpu.matmul %14, %15, %cst_13 {dimension_numbers = #tpu.dot_dimension_numbers<[1], [0], [0], [1], [0, 0, 1, 1], [], []>, precision = #tpu.contract_precision<fp32>} : vector<64x32xf32>, vector<32x2xf32>, vector<64x2xf32> -> vector<64x2xf32>
    %c0_14 = arith.constant 0 : index
    %c0_15 = arith.constant 0 : index
    %17 = vector.load %arg8[%c0_14, %c0_15] : memref<1x2xf32, #tpu.memory_space<vmem>>, vector<1x2xf32>
    %18 = vector.broadcast %17 : vector<1x2xf32> to vector<64x2xf32>
    %19 = arith.addf %16, %18 : vector<64x2xf32>
    %cst_16 = arith.constant dense<0xFF800000> : vector<64xf32>
    %20 = vector.multi_reduction <maximumf>, %19, %cst_16 [1] : vector<64x2xf32> to vector<64xf32>
    %21 = vector.shape_cast %20 : vector<64xf32> to vector<64x1xf32>
    %22 = vector.broadcast %21 : vector<64x1xf32> to vector<64x2xf32>
    %23 = arith.subf %19, %22 : vector<64x2xf32>
    %24 = math.exp %23 : vector<64x2xf32>
    %cst_17 = arith.constant dense<0.000000e+00> : vector<64xf32>
    %25 = vector.multi_reduction <add>, %24, %cst_17 [1] : vector<64x2xf32> to vector<64xf32>
    %26 = vector.shape_cast %25 : vector<64xf32> to vector<64x1xf32>
    %27 = vector.broadcast %26 : vector<64x1xf32> to vector<64x2xf32>
    %28 = arith.divf %24, %27 : vector<64x2xf32>
    %c0_18 = arith.constant 0 : index
    %c0_19 = arith.constant 0 : index
    %29 = vector.load %arg14[%c0_18, %c0_19] : memref<64x2xf32, #tpu.memory_space<vmem>>, vector<64x2xf32>
    tpu.vector_store %arg14[%c0_18, %c0_19], %28 {strides = array<i32>} : memref<64x2xf32, #tpu.memory_space<vmem>>, vector<64x2xf32>,
    %c0_20 = arith.constant 0 : index
    %c0_21 = arith.constant 0 : index
    %30 = vector.load %arg2[%c0_20, %c0_21] : memref<64x56xf32, #tpu.memory_space<vmem>>, vector<64x56xf32>
    %c0_22 = arith.constant 0 : index
    %c0_23 = arith.constant 0 : index
    %31 = vector.load %arg9[%c0_22, %c0_23] : memref<56x16xf32, #tpu.memory_space<vmem>>, vector<56x16xf32>
    %cst_24 = arith.constant dense<0.000000e+00> : vector<64x16xf32>
    %32 = tpu.matmul %30, %31, %cst_24 {dimension_numbers = #tpu.dot_dimension_numbers<[1], [0], [0], [1], [0, 0, 1, 1], [], []>, precision = #tpu.contract_precision<fp32>} : vector<64x56xf32>, vector<56x16xf32>, vector<64x16xf32> -> vector<64x16xf32>
    %c0_25 = arith.constant 0 : index
    %c0_26 = arith.constant 0 : index
    %33 = vector.load %arg10[%c0_25, %c0_26] : memref<1x16xf32, #tpu.memory_space<vmem>>, vector<1x16xf32>
    %34 = vector.broadcast %33 : vector<1x16xf32> to vector<64x16xf32>
    %35 = arith.addf %32, %34 : vector<64x16xf32>
    %c0_27 = arith.constant 0 : index
    %c0_28 = arith.constant 0 : index
    %36 = vector.load %arg3[%c0_27, %c0_28] : memref<64x16xf32, #tpu.memory_space<vmem>>, vector<64x16xf32>
    %37 = arith.mulf %35, %36 : vector<64x16xf32>
    %cst_29 = arith.constant 5.000000e-01 : f32
    %38 = vector.broadcast %cst_29 : f32 to vector<64x16xf32>
    %39 = arith.mulf %38, %37 : vector<64x16xf32>
    %40 = math.tanh %39 : vector<64x16xf32>
    %cst_30 = arith.constant 5.000000e-01 : f32
    %41 = vector.broadcast %cst_30 : f32 to vector<64x16xf32>
    %42 = arith.mulf %41, %40 : vector<64x16xf32>
    %cst_31 = arith.constant 5.000000e-01 : f32
    %43 = vector.broadcast %cst_31 : f32 to vector<64x16xf32>
    %44 = arith.addf %42, %43 : vector<64x16xf32>
    %c0_32 = arith.constant 0 : index
    %c0_33 = arith.constant 0 : index
    %45 = vector.load %arg11[%c0_32, %c0_33] : memref<2x16xf32, #tpu.memory_space<vmem>>, vector<2x16xf32>
    %cst_34 = arith.constant dense<0.000000e+00> : vector<64x16xf32>
    %46 = tpu.matmul %28, %45, %cst_34 {dimension_numbers = #tpu.dot_dimension_numbers<[1], [0], [0], [1], [0, 0, 1, 1], [], []>, precision = #tpu.contract_precision<fp32>} : vector<64x2xf32>, vector<2x16xf32>, vector<64x16xf32> -> vector<64x16xf32>
    %47 = arith.mulf %44, %46 : vector<64x16xf32>
    %c0_35 = arith.constant 0 : index
    %c0_36 = arith.constant 0 : index
    %48 = vector.load %arg12[%c0_35, %c0_36] : memref<16x8xf32, #tpu.memory_space<vmem>>, vector<16x8xf32>
    %cst_37 = arith.constant dense<0.000000e+00> : vector<64x8xf32>
    %49 = tpu.matmul %47, %48, %cst_37 {dimension_numbers = #tpu.dot_dimension_numbers<[1], [0], [0], [1], [0, 0, 1, 1], [], []>, precision = #tpu.contract_precision<fp32>} : vector<64x16xf32>, vector<16x8xf32>, vector<64x8xf32> -> vector<64x8xf32>
    %cst_38 = arith.constant 1.000000e-07 : f32
    %cst_39 = arith.constant 0.99999988 : f32
    %50 = vector.broadcast %cst_38 : f32 to vector<64x8xf32>
    %51 = arith.maximumf %50, %49 : vector<64x8xf32>
    %52 = vector.broadcast %cst_39 : f32 to vector<64x8xf32>
    %53 = arith.minimumf %52, %51 : vector<64x8xf32>
    %c0_40 = arith.constant 0 : index
    %c0_41 = arith.constant 0 : index
    %54 = vector.load %arg13[%c0_40, %c0_41] : memref<64x8xf32, #tpu.memory_space<vmem>>, vector<64x8xf32>
    tpu.vector_store %arg13[%c0_40, %c0_41], %53 {strides = array<i32>} : memref<64x8xf32, #tpu.memory_space<vmem>>, vector<64x8xf32>,
    return
  }
  func.func @transform_0(%arg0: i32) -> (i32, i32) {
    %c0_i32 = arith.constant 0 : i32
    %c0_i32_0 = arith.constant 0 : i32
    return %arg0, %c0_i32 : i32, i32
  }
  func.func @transform_1(%arg0: i32) -> (i32, i32) {
    %c0_i32 = arith.constant 0 : i32
    %c0_i32_0 = arith.constant 0 : i32
    return %arg0, %c0_i32 : i32, i32
  }
  func.func @transform_2(%arg0: i32) -> (i32, i32) {
    %c0_i32 = arith.constant 0 : i32
    %c0_i32_0 = arith.constant 0 : i32
    return %arg0, %c0_i32 : i32, i32
  }
  func.func @transform_3(%arg0: i32) -> (i32, i32) {
    %c0_i32 = arith.constant 0 : i32
    %c0_i32_0 = arith.constant 0 : i32
    %c0_i32_1 = arith.constant 0 : i32
    return %c0_i32, %c0_i32_0 : i32, i32
  }
  func.func @transform_4(%arg0: i32) -> (i32, i32) {
    %c0_i32 = arith.constant 0 : i32
    %c0_i32_0 = arith.constant 0 : i32
    %c0_i32_1 = arith.constant 0 : i32
    return %c0_i32, %c0_i32_0 : i32, i32
  }
  func.func @transform_5(%arg0: i32) -> (i32, i32) {
    %c0_i32 = arith.constant 0 : i32
    %c0_i32_0 = arith.constant 0 : i32
    %c0_i32_1 = arith.constant 0 : i32
    return %c0_i32, %c0_i32_0 : i32, i32
  }
  func.func @transform_6(%arg0: i32) -> (i32, i32) {
    %c0_i32 = arith.constant 0 : i32
    %c0_i32_0 = arith.constant 0 : i32
    %c0_i32_1 = arith.constant 0 : i32
    return %c0_i32, %c0_i32_0 : i32, i32
  }
  func.func @transform_7(%arg0: i32) -> (i32, i32) {
    %c0_i32 = arith.constant 0 : i32
    %c0_i32_0 = arith.constant 0 : i32
    %c0_i32_1 = arith.constant 0 : i32
    return %c0_i32, %c0_i32_0 : i32, i32
  }
  func.func @transform_8(%arg0: i32) -> (i32, i32) {
    %c0_i32 = arith.constant 0 : i32
    %c0_i32_0 = arith.constant 0 : i32
    %c0_i32_1 = arith.constant 0 : i32
    return %c0_i32, %c0_i32_0 : i32, i32
  }
  func.func @transform_9(%arg0: i32) -> (i32, i32) {
    %c0_i32 = arith.constant 0 : i32
    %c0_i32_0 = arith.constant 0 : i32
    %c0_i32_1 = arith.constant 0 : i32
    return %c0_i32, %c0_i32_0 : i32, i32
  }
  func.func @transform_10(%arg0: i32) -> (i32, i32) {
    %c0_i32 = arith.constant 0 : i32
    %c0_i32_0 = arith.constant 0 : i32
    %c0_i32_1 = arith.constant 0 : i32
    return %c0_i32, %c0_i32_0 : i32, i32
  }
  func.func @transform_11(%arg0: i32) -> (i32, i32) {
    %c0_i32 = arith.constant 0 : i32
    %c0_i32_0 = arith.constant 0 : i32
    %c0_i32_1 = arith.constant 0 : i32
    return %c0_i32, %c0_i32_0 : i32, i32
  }
  func.func @transform_12(%arg0: i32) -> (i32, i32) {
    %c0_i32 = arith.constant 0 : i32
    %c0_i32_0 = arith.constant 0 : i32
    return %arg0, %c0_i32 : i32, i32
  }
  func.func @transform_13(%arg0: i32) -> (i32, i32) {
    %c0_i32 = arith.constant 0 : i32
    %c0_i32_0 = arith.constant 0 : i32
    return %arg0, %c0_i32 : i32, i32
  }
}

</mosaic_0001>

<bundles_post_ra>
// kernel: tpu_custom_call.1
= control target key start
LH: loop header
LB: loop body
LE: loop exit
PB: predicated region body
PF: predicated region fallthrough
CT: control target
= control target key end

     0   :  { %vm60_vm0 = vcmask 261120   ;;  %vm2527_vm1 = vcmask 15360   ;;  %vm2646_vm2 = vcmask 457728   ;;  %vm3569_vm3 = vcmask 1041408   ;;  %s8119_s3 = inlined_call_operand.vmem [shape: f32[32,32], index: 3, kind: input, shape index: {}]   ;;  %s8120_s0 = inlined_call_operand.vmem [shape: f32[64,32], index: 0, kind: input, shape index: {}]   ;;  %s8121_s4 = inlined_call_operand.vmem [shape: f32[32,32], index: 4, kind: input, shape index: {}]   ;;  %s8122_s6 = inlined_call_operand.vmem [shape: f32[2,32], index: 6, kind: input, shape index: {}]   ;;  %s8123_s5 = inlined_call_operand.vmem [shape: f32[32,2], index: 5, kind: input, shape index: {}]   ;;  %s8124_s7 = inlined_call_operand.vmem [shape: f32[1,2], index: 7, kind: input, shape index: {}]   ;;  %s8125_s8 = inlined_call_operand.vmem [shape: f32[56,16], index: 8, kind: input, shape index: {}]   ;;  %s8126_s1 = inlined_call_operand.vmem [shape: f32[64,56], index: 1, kind: input, shape index: {}]   ;;  %s8127_s10 = inlined_call_operand.vmem [shape: f32[2,16], index: 10, kind: input, shape index: {}]   ;;  %s8128_s13 = inlined_call_operand.vmem [shape: f32[64,2], index: 13, kind: output, shape index: {1}]   ;;  %s8129_s11 = inlined_call_operand.vmem [shape: f32[16,8], index: 11, kind: input, shape index: {}]   ;;  %s8130_s9 = inlined_call_operand.vmem [shape: f32[1,16], index: 9, kind: input, shape index: {}]   ;;  %s8131_s2 = inlined_call_operand.vmem [shape: f32[64,16], index: 2, kind: input, shape index: {}]   ;;  %s8132_s12 = inlined_call_operand.vmem [shape: f32[64,8], index: 12, kind: output, shape index: {0}]  }
   0x1   :  { %v51_v0 = vld [vmem:[%s8119_s3] sm:$0xff]  ;;  %v52_v1 = vld [vmem:[%s8119_s3 + $0x8] sm:$0xff]  ;;  %v53_v2 = vld [vmem:[%s8119_s3 + $0x10] sm:$0xff]  ;;  %vm4330_vm4 = vcmask 130048   ;;  %vm5131_vm5 = vcmask 64512  }
   0x2   :  { %v86_v3 = vand.u32 4294901760, %v51_v0  ;;  %v89_v4 = vand.u32 4294901760, %v52_v1  ;;  %v54_v5 = vld [vmem:[%s8119_s3 + $0x18] sm:$0xff]  ;;  %v92_v6 = vand.u32 4294901760, %v53_v2  ;;  %v43_v7 = vld [vmem:[%s8120_s0] sm:$0xff]  ;;  %v44_v8 = vld [vmem:[%s8120_s0 + $0x8] sm:$0xff] }
   0x3   :  { %v95_v9 = vand.u32 4294901760, %v54_v5  ;;  %v62_v10 = vsel %vm60_vm0, %v43_v7, 0  ;;  %v65_v11 = vsel %vm60_vm0, %v44_v8, 0  ;;  %v45_v12 = vld [vmem:[%s8120_s0 + $0x10] sm:$0xff]  ;;  %v46_v13 = vld [vmem:[%s8120_s0 + $0x18] sm:$0xff]  ;;  %v47_v18 = vld [vmem:[%s8120_s0 + $0x20] sm:$0xff] }
   0x4   :  { %v6924_v14 = vpack.c.bf16 %v89_v4, %v86_v3  ;;  %v6926_v15 = vand.u32 4294901760, %v62_v10  ;;  %v6928_v16 = vand.u32 4294901760, %v65_v11  ;;  %v6930_v17 = vsub.f32 %v51_v0, %v86_v3  ;;  %v48_v19 = vld [vmem:[%s8120_s0 + $0x28] sm:$0xff]  ;;  %v49_v48 = vld [vmem:[%s8120_s0 + $0x30] sm:$0xff]  ;;  %v50_v57 = vld [vmem:[%s8120_s0 + $0x38] sm:$0xff] }
   0x5   :  { %v6938_v20 = vpack.c.bf16 %v95_v9, %v92_v6  ;;  %v6940_v21 = vsub.f32 %v52_v1, %v89_v4  ;;  %v68_v22 = vsel %vm60_vm0, %v45_v12, 0  ;;  %v71_v23 = vsel %vm60_vm0, %v46_v13, 0 }
   0x6   :  { %6269 = vmatprep.subr.bf16.mxu0 %v6924_v14  ;;  %v6946_v24 = vsub.f32 %v62_v10, %v6926_v15  ;;  %v6949_v25 = vsub.f32 %v65_v11, %v6928_v16  ;;  %v237_v26 = vand.u32 4294901760, %v6930_v17  ;;  %v6952_v27 = vand.u32 4294901760, %v68_v22 }
   0x7   :  { %6271 = vmatpush3.bf16.msra.mxu0 %v6924_v14  ;;  %v244_v28 = vand.u32 4294901760, %v6940_v21  ;;  %v6956_v29 = vand.u32 4294901760, %v71_v23  ;;  %v74_v30 = vsel %vm60_vm0, %v47_v18, 0  ;;  %v77_v31 = vsel %vm60_vm0, %v48_v19, 0 }
   0x8   :  { %6273 = vmatprep.subr.bf16.mxu0 %v6938_v20  ;;  %v156_v32 = vand.u32 4294901760, %v6946_v24  ;;  %v166_v33 = vand.u32 4294901760, %v6949_v25  ;;  %v238_v34 = vsub.f32 %v6930_v17, %v237_v26  ;;  %v6967_v35 = vsub.f32 %v68_v22, %v6952_v27 }
   0x9   :  { %v245_v36 = vsub.f32 %v6940_v21, %v244_v28  ;;  %v6973_v37 = vsub.f32 %v71_v23, %v6956_v29  ;;  %v6975_v38 = vand.u32 4294901760, %v74_v30  ;;  %v6977_v39 = vand.u32 4294901760, %v77_v31 }
   0xa   :  { %v157_v40 = vsub.f32 %v6946_v24, %v156_v32  ;;  %v167_v41 = vsub.f32 %v6949_v25, %v166_v33  ;;  %v239_v42 = vand.u32 4294901760, %v238_v34  ;;  %v176_v43 = vand.u32 4294901760, %v6967_v35 }
   0xb   :  { %6275 = vmatpush3.bf16.msra.mxu0 %v6938_v20  ;;  %v246_v44 = vand.u32 4294901760, %v245_v36  ;;  %v186_v45 = vand.u32 4294901760, %v6973_v37  ;;  %v6989_v46 = vsub.f32 %v74_v30, %v6975_v38  ;;  %v6992_v47 = vsub.f32 %v77_v31, %v6977_v39 }
   0xc   :  { %v158_v49 = vand.u32 4294901760, %v157_v40  ;;  %v168_v50 = vand.u32 4294901760, %v167_v41  ;;  %v177_v51 = vsub.f32 %v6967_v35, %v176_v43  ;;  %v7000_v52 = vsub.f32 %v53_v2, %v92_v6 }
   0xd   :  { %v6276_v53 = vpack.c.bf16 %v246_v44, %v239_v42  ;;  %v187_v54 = vsub.f32 %v6973_v37, %v186_v45  ;;  %v196_v55 = vand.u32 4294901760, %v6989_v46  ;;  %v206_v56 = vand.u32 4294901760, %v6992_v47 }
   0xe   :  { %5580 = vmatprep.mubr.f32.mxu0 %v158_v49  ;;  %v178_v58 = vand.u32 4294901760, %v177_v51  ;;  %v251_v59 = vand.u32 4294901760, %v7000_v52  ;;  %v7011_v60 = vsub.f32 %v54_v5, %v95_v9  ;;  %v80_v61 = vsel %vm60_vm0, %v49_v48, 0 }
   0xf   :  { %5581 = vmatmul.mubr.f32.vlgmr.msra.gmra.mrb[0].mxu0 %v168_v50  ;;  %6277 = vmatprep.subr.bf16.mxu0 %v6276_v53  ;;  %v188_v62 = vand.u32 4294901760, %v187_v54  ;;  %v197_v63 = vsub.f32 %v6989_v46, %v196_v55  ;;  %v207_v0 = vsub.f32 %v6992_v47, %v206_v56  ;;  %v7020_v1 = vand.u32 4294901760, %v80_v61 }
  0x10   :  { %6279 = vmatpush3.bf16.msra.mxu0 %v6276_v53  ;;  %5583 = vmatprep.mubr.f32.mxu0 %v178_v58  ;;  %v252_v2 = vsub.f32 %v7000_v52, %v251_v59  ;;  %v258_v3 = vand.u32 4294901760, %v7011_v60  ;;  %v83_v4 = vsel %vm60_vm0, %v50_v57, 0  ;;  %v6284_v23 = vpack.c.bf16 %v6940_v21, %v6930_v17 }
  0x11   :  { %v198_v5 = vand.u32 4294901760, %v197_v63  ;;  %v215_v6 = vsub.f32 %v80_v61, %v7020_v1  ;;  %v7028_v7 = vand.u32 4294901760, %v83_v4  ;;  %v208_v10 = vand.u32 4294901760, %v207_v0 }
  0x12   :  { %v253_v8 = vand.u32 4294901760, %v252_v2  ;;  %v259_v9 = vsub.f32 %v7011_v60, %v258_v3  ;;  %v6288_v36 = vpack.c.bf16 %v7011_v60, %v7000_v52  ;;  %v6300_v40 = vpack.c.bf16 %v244_v28, %v237_v26 }
  0x13   :  { %5584 = vmatmul.mubr.f32.gmra.mrb[2].mxu0 %v188_v62  ;;  %v216_v11 = vand.u32 4294901760, %v215_v6  ;;  %v225_v12 = vsub.f32 %v83_v4, %v7028_v7  ;;  %v6304_v17 = vpack.c.bf16 %v258_v3, %v251_v59 }
  0x14   :  { %5586 = vmatprep.mubr.f32.mxu0 %v198_v5  ;;  %v260_v13 = vand.u32 4294901760, %v259_v9 }
  0x15   :  { %v217_v18 = vsub.f32 %v215_v6, %v216_v11  ;;  %v226_v19 = vand.u32 4294901760, %v225_v12 }
  0x16   :  { %v6280_v22 = vpack.c.bf16 %v260_v13, %v253_v8 }
  0x17   :  { %5587 = vmatmul.mubr.f32.gmra.mrb[4].mxu0 %v208_v10  ;;  %v218_v30 = vand.u32 4294901760, %v217_v18  ;;  %v227_v31 = vsub.f32 %v225_v12, %v226_v19 }
  0x18   :  { %6281 = vmatprep.subr.bf16.mxu0 %v6280_v22 }
  0x19   :  { %6283 = vmatpush3.bf16.msra.mxu0 %v6280_v22  ;;  %5589 = vmatprep.mubr.f32.mxu0 %v218_v30  ;;  %v228_v34 = vand.u32 4294901760, %v227_v31 }
  0x1a   :  { %6285 = vmatprep.subr.bf16.mxu0 %v6284_v23 }
  0x1b   :  { %5590 = vmatmul.mubr.f32.gmra.mrb[6].mxu0 %v228_v34 }
  0x1c   :  { %5600 = vmatprep.mubr.f32.mxu0 %v6926_v15 }
  0x1f   :  { %5601 = vmatmul.mubr.f32.vlgmr.msra.gmra.mrb[0].mxu0 %v6928_v16 }
  0x20   :  { %6287 = vmatpush3.bf16.msra.mxu0 %v6284_v23  ;;  %5603 = vmatprep.mubr.f32.mxu0 %v6952_v27 }
  0x21   :  { %6289 = vmatprep.subr.bf16.mxu0 %v6288_v36 }
  0x23   :  { %5604 = vmatmul.mubr.f32.gmra.mrb[2].mxu0 %v6956_v29 }
  0x24   :  { %5606 = vmatprep.mubr.f32.mxu0 %v6975_v38  ;;  %6291 = vmatpush3.bf16.msra.mxu0 %v6288_v36 }
  0x25   :  { %6293 = vmatprep.subr.bf16.mxu0 %v6924_v14 }
  0x27   :  { %5607 = vmatmul.mubr.f32.gmra.mrb[4].mxu0 %v6977_v39 }
  0x28   :  { %5609 = vmatprep.mubr.f32.mxu0 %v7020_v1 }
  0x2b   :  { %5610 = vmatmul.mubr.f32.gmra.mrb[6].mxu0 %v7028_v7 }
  0x2c   :  { %5620 = vmatprep.mubr.f32.mxu0 %v6946_v24  ;;  %v881_v24 = vld [vmem:[%s8121_s4 + $0x10] sm:$0xff] }
  0x2d   :  { %v919_v26 = vand.u32 4294901760, %v881_v24 }
  0x2f   :  { %5621 = vmatmul.mubr.f32.vlgmr.msra.gmra.mrb[0].mxu0 %v6949_v25  ;;  %v882_v25 = vld [vmem:[%s8121_s4 + $0x18] sm:$0xff]  ;;  %v1077_v42 = vsub.f32 %v881_v24, %v919_v26 }
  0x30   :  { %6295 = vmatpush3.bf16.msra.mxu0 %v6924_v14  ;;  %5623 = vmatprep.mubr.f32.mxu0 %v6967_v35 }
  0x31   :  { %6297 = vmatprep.subr.bf16.mxu0 %v6938_v20 }
  0x33   :  { %5624 = vmatmul.mubr.f32.gmra.mrb[2].mxu0 %v6973_v37 }
  0x34   :  { %5626 = vmatprep.mubr.f32.mxu0 %v6989_v46  ;;  %6299 = vmatpush3.bf16.msra.mxu0 %v6938_v20 }
  0x35   :  { %6301 = vmatprep.subr.bf16.mxu0 %v6300_v40 }
  0x37   :  { %5627 = vmatmul.mubr.f32.gmra.mrb[4].mxu0 %v6992_v47 }
  0x38   :  { %5629 = vmatprep.mubr.f32.mxu0 %v215_v6 }
  0x3b   :  { %5630 = vmatmul.mubr.f32.gmra.mrb[6].mxu0 %v225_v12 }
  0x3c   :  { %5640 = vmatprep.mubr.f32.mxu0 %v156_v32 }
  0x3f   :  { %5641 = vmatmul.mubr.f32.vlgmr.msra.gmra.mrb[0].mxu0 %v166_v33 }
  0x40   :  { %6303 = vmatpush3.bf16.msra.mxu0 %v6300_v40  ;;  %5643 = vmatprep.mubr.f32.mxu0 %v176_v43 }
  0x41   :  { %6305 = vmatprep.subr.bf16.mxu0 %v6304_v17 }
  0x43   :  { %5644 = vmatmul.mubr.f32.gmra.mrb[2].mxu0 %v186_v45  ;;  %v1078_v45 = vand.u32 4294901760, %v1077_v42 }
  0x44   :  { %5646 = vmatprep.mubr.f32.mxu0 %v196_v55  ;;  %6307 = vmatpush3.bf16.msra.mxu0 %v6304_v17 }
  0x45   :  { %6309 = vmatprep.subr.bf16.mxu0 %v6924_v14  ;;  %v1079_v47 = vsub.f32 %v1077_v42, %v1078_v45 }
  0x47   :  { %5647 = vmatmul.mubr.f32.gmra.mrb[4].mxu0 %v206_v56  ;;  %v1080_v49 = vand.u32 4294901760, %v1079_v47  ;;  %v5148_v56 = vld [vmem:[%s8122_s6] ss:$0 sm:$0xff] }
  0x48   :  { %5649 = vmatprep.mubr.f32.mxu0 %v216_v11 }
  0x4b   :  { %5650 = vmatmul.mubr.f32.gmra.mrb[6].mxu0 %v226_v19 }
  0x4c   :  { %5660 = vmatprep.mubr.f32.mxu0 %v6926_v15 }
  0x4f   :  { %5661 = vmatmul.mubr.f32.vlgmr.msra.gmra.mrb[0].mxu0 %v6928_v16 }
  0x50   :  { %6311 = vmatpush3.bf16.msra.mxu0 %v6924_v14  ;;  %5663 = vmatprep.mubr.f32.mxu0 %v6952_v27  ;;  %v879_v14 = vld [vmem:[%s8121_s4] sm:$0xff] }
  0x51   :  { %6313 = vmatprep.subr.bf16.mxu0 %v6938_v20 }
  0x53   :  { %5664 = vmatmul.mubr.f32.gmra.mrb[2].mxu0 %v6956_v29 }
  0x54   :  { %5666 = vmatprep.mubr.f32.mxu0 %v6975_v38  ;;  %6315 = vmatpush3.bf16.msra.mxu0 %v6938_v20 }
  0x57   :  { %5667 = vmatmul.mubr.f32.gmra.mrb[4].mxu0 %v6977_v39 }
  0x58   :  { %5669 = vmatprep.mubr.f32.mxu0 %v7020_v1 }
  0x5b   :  { %5670 = vmatmul.mubr.f32.gmra.mrb[6].mxu0 %v7028_v7 }
  0x5c   :  { %5680 = vmatprep.mubr.f32.mxu0 %v6926_v15  ;;  %v880_v15 = vld [vmem:[%s8121_s4 + $0x8] sm:$0xff] }
  0x5d   :  { %v916_v20 = vand.u32 4294901760, %v880_v15 }
  0x5f   :  { %5681 = vmatmul.mubr.f32.vlgmr.msra.gmra.mrb[0].mxu0 %v6928_v16  ;;  %v913_v16 = vand.u32 4294901760, %v879_v14  ;;  %v1070_v32 = vsub.f32 %v880_v15, %v916_v20 }
  0x60   :  { %5683 = vmatprep.mubr.f32.mxu0 %v6952_v27  ;;  %v922_v27 = vand.u32 4294901760, %v882_v25 }
  0x61   :  { %v7098_v21 = vpack.c.bf16 %v916_v20, %v913_v16  ;;  %v1071_v35 = vand.u32 4294901760, %v1070_v32 }
  0x62   :  { %v7108_v28 = vpack.c.bf16 %v922_v27, %v919_v26  ;;  %v1084_v43 = vsub.f32 %v882_v25, %v922_v27 }
  0x63   :  { %5684 = vmatmul.mubr.f32.gmra.mrb[2].mxu0 %v6956_v29  ;;  %6317 = vmatprep.subr.bf16.mxu1 %v7098_v21  ;;  %v1063_v29 = vsub.f32 %v879_v14, %v913_v16 }
  0x64   :  { %5686 = vmatprep.mubr.f32.mxu0 %v6975_v38  ;;  %6319 = vmatpush3.bf16.msra.mxu1 %v7098_v21  ;;  %v1072_v38 = vsub.f32 %v1070_v32, %v1071_v35  ;;  %v1085_v46 = vand.u32 4294901760, %v1084_v43  ;;  %v7119_v53 = vpack.c.bf16 %v1084_v43, %v1077_v42 }
  0x65   :  { %6321 = vmatprep.subr.bf16.mxu1 %v7108_v28  ;;  %v1064_v33 = vand.u32 4294901760, %v1063_v29  ;;  %v7117_v52 = vpack.c.bf16 %v1070_v32, %v1063_v29 }
  0x66   :  { %v1073_v41 = vand.u32 4294901760, %v1072_v38  ;;  %v1086_v48 = vsub.f32 %v1084_v43, %v1085_v46  ;;  %v7123_v55 = vpack.c.bf16 %v1085_v46, %v1078_v45 }
  0x67   :  { %5687 = vmatmul.mubr.f32.gmra.mrb[4].mxu0 %v6977_v39  ;;  %v1065_v37 = vsub.f32 %v1063_v29, %v1064_v33  ;;  %v7121_v54 = vpack.c.bf16 %v1071_v35, %v1064_v33 }
  0x68   :  { %5689 = vmatprep.mubr.f32.mxu0 %v7020_v1  ;;  %6323 = vmatpush3.bf16.msra.mxu1 %v7108_v28  ;;  %v1087_v50 = vand.u32 4294901760, %v1086_v48 }
  0x69   :  { %v1066_v39 = vand.u32 4294901760, %v1065_v37 }
  0x6a   :  { %v7115_v51 = vpack.c.bf16 %v1087_v50, %v1080_v49 }
  0x6b   :  { %5690 = vmatmul.mubr.f32.gmra.mrb[6].mxu0 %v7028_v7  ;;  %v7112_v44 = vpack.c.bf16 %v1073_v41, %v1066_v39 }
  0x6d   :  { %6325 = vmatprep.subr.bf16.mxu1 %v7112_v44 }
 0x132   :  { %v5682_v57 = vpop.f32.mrb[0].mxu0 }
 0x133   :  { %v6508_v58 = vadd.f32 %v5682_v57, %v5148_v56  ;;  %v825_v59 = vpop.f32.mrb[1].mxu0 }
 0x134   :  { %v6509_v60 = vadd.f32 %v5148_v56, %v825_v59 }
 0x135   :  { %v872_v61 = vmax.f32 %v6508_v58, 0.0 }
 0x136   :  { %v871_v62 = vmax.f32 %v6509_v60, 0.0  ;;  %v5685_v63 = vpop.f32.mrb[2].mxu0 }
 0x137   :  { %v892_v0 = vsel %vm60_vm0, %v872_v61, 0  ;;  %v6510_v1 = vadd.f32 %v5685_v63, %v5148_v56  ;;  %v837_v2 = vpop.f32.mrb[3].mxu0 }
 0x138   :  { %v7129_v3 = vand.u32 4294901760, %v892_v0  ;;  %v889_v4 = vsel %vm60_vm0, %v871_v62, 0  ;;  %v6511_v5 = vadd.f32 %v5148_v56, %v837_v2 }
 0x139   :  { %v7132_v6 = vand.u32 4294901760, %v889_v4  ;;  %v874_v7 = vmax.f32 %v6510_v1, 0.0 }
 0x13a   :  { %v7135_v8 = vsub.f32 %v892_v0, %v7129_v3  ;;  %v873_v9 = vmax.f32 %v6511_v5, 0.0  ;;  %v5688_v10 = vpop.f32.mrb[4].mxu0 }
 0x13b   :  { %v7138_v11 = vsub.f32 %v889_v4, %v7132_v6  ;;  %v898_v12 = vsel %vm60_vm0, %v874_v7, 0  ;;  %v6512_v13 = vadd.f32 %v5688_v10, %v5148_v56  ;;  %v849_v18 = vpop.f32.mrb[5].mxu0 }
 0x13c   :  { %v7141_v19 = vand.u32 4294901760, %v898_v12  ;;  %v895_v22 = vsel %vm60_vm0, %v873_v9, 0  ;;  %v6513_v23 = vadd.f32 %v5148_v56, %v849_v18  ;;  %v993_v30 = vand.u32 4294901760, %v7135_v8 }
 0x13d   :  { %v7145_v31 = vand.u32 4294901760, %v895_v22  ;;  %v876_v34 = vmax.f32 %v6512_v13, 0.0  ;;  %v983_v36 = vand.u32 4294901760, %v7138_v11 }
 0x13e   :  { %v7149_v40 = vsub.f32 %v898_v12, %v7141_v19  ;;  %v875_v17 = vmax.f32 %v6513_v23, 0.0  ;;  %v5691_v14 = vpop.f32.mrb[6].mxu0  ;;  %v994_v15 = vsub.f32 %v7135_v8, %v993_v30 }
 0x13f   :  { %v7155_v16 = vsub.f32 %v895_v22, %v7145_v31  ;;  %v904_v20 = vsel %vm60_vm0, %v876_v34, 0  ;;  %v6514_v24 = vadd.f32 %v5691_v14, %v5148_v56  ;;  %v861_v25 = vpop.f32.mrb[7].mxu0  ;;  %v984_v26 = vsub.f32 %v7138_v11, %v983_v36 }
 0x140   :  { %v7161_v27 = vand.u32 4294901760, %v904_v20  ;;  %v901_v29 = vsel %vm60_vm0, %v875_v17, 0  ;;  %v6515_v32 = vadd.f32 %v5148_v56, %v861_v25  ;;  %v995_v42 = vand.u32 4294901760, %v994_v15 }
 0x141   :  { %v7164_v33 = vand.u32 4294901760, %v901_v29  ;;  %v878_v35 = vmax.f32 %v6514_v24, 0.0  ;;  %v985_v37 = vand.u32 4294901760, %v984_v26  ;;  %v1003_v38 = vand.u32 4294901760, %v7155_v16 }
 0x142   :  { %v7168_v39 = vsub.f32 %v904_v20, %v7161_v27  ;;  %v877_v41 = vmax.f32 %v6515_v32, 0.0  ;;  %v1013_v43 = vand.u32 4294901760, %v7149_v40  ;;  %v5149_v32 = vld [vmem:[%s8122_s6 + $0x1] ss:$0 sm:$0xff] }
 0x143   :  { %v7172_v45 = vsub.f32 %v901_v29, %v7164_v33  ;;  %v910_v46 = vsel %vm60_vm0, %v878_v35, 0  ;;  %5700 = vmatprep.mubr.f32.mxu1 %v985_v37  ;;  %v1004_v47 = vsub.f32 %v7155_v16, %v1003_v38 }
 0x144   :  { %v7178_v48 = vand.u32 4294901760, %v910_v46  ;;  %v907_v49 = vsel %vm60_vm0, %v877_v41, 0  ;;  %5701 = vmatmul.mubr.f32.vlgmr.msra.gmra.mrb[0].mxu1 %v995_v42  ;;  %v1014_v50 = vsub.f32 %v7149_v40, %v1013_v43  ;;  %v1033_v56 = vand.u32 4294901760, %v7168_v39 }
 0x145   :  { %v7185_v57 = vand.u32 4294901760, %v907_v49  ;;  %6327 = vmatpush3.bf16.msra.mxu1 %v7112_v44  ;;  %v1005_v58 = vand.u32 4294901760, %v1004_v47  ;;  %v1023_v59 = vand.u32 4294901760, %v7172_v45 }
 0x146   :  { %v1052_v60 = vsub.f32 %v910_v46, %v7178_v48  ;;  %v1015_v61 = vand.u32 4294901760, %v1014_v50  ;;  %v1034_v62 = vsub.f32 %v7168_v39, %v1033_v56  ;;  %6329 = vmatprep.subr.bf16.mxu1 %v7115_v51 }
 0x147   :  { %v1042_v63 = vsub.f32 %v907_v49, %v7185_v57  ;;  %5703 = vmatprep.mubr.f32.mxu1 %v1005_v58  ;;  %v1024_v0 = vsub.f32 %v7172_v45, %v1023_v59 }
 0x148   :  { %5704 = vmatmul.mubr.f32.gmra.mrb[2].mxu1 %v1015_v61  ;;  %v1053_v1 = vand.u32 4294901760, %v1052_v60  ;;  %v1035_v4 = vand.u32 4294901760, %v1034_v62 }
 0x149   :  { %v1025_v2 = vand.u32 4294901760, %v1024_v0  ;;  %6331 = vmatpush3.bf16.msra.mxu1 %v7115_v51  ;;  %v1043_v44 = vand.u32 4294901760, %v1042_v63 }
 0x14a   :  { %v1054_v5 = vsub.f32 %v1052_v60, %v1053_v1  ;;  %6333 = vmatprep.subr.bf16.mxu1 %v7117_v52 }
 0x14b   :  { %5706 = vmatprep.mubr.f32.mxu1 %v1025_v2  ;;  %v1044_v7 = vsub.f32 %v1042_v63, %v1043_v44 }
 0x14c   :  { %5707 = vmatmul.mubr.f32.gmra.mrb[4].mxu1 %v1035_v4  ;;  %v1055_v10 = vand.u32 4294901760, %v1054_v5 }
 0x14d   :  { %v1045_v9 = vand.u32 4294901760, %v1044_v7 }
 0x14f   :  { %5709 = vmatprep.mubr.f32.mxu1 %v1045_v9 }
 0x150   :  { %5710 = vmatmul.mubr.f32.gmra.mrb[6].mxu1 %v1055_v10 }
 0x151   :  { %5720 = vmatprep.mubr.f32.mxu1 %v7132_v6 }
 0x154   :  { %5721 = vmatmul.mubr.f32.vlgmr.msra.gmra.mrb[0].mxu1 %v7129_v3 }
 0x155   :  { %5723 = vmatprep.mubr.f32.mxu1 %v7145_v31  ;;  %6335 = vmatpush3.bf16.msra.mxu1 %v7117_v52 }
 0x156   :  { %6337 = vmatprep.subr.bf16.mxu1 %v7119_v53 }
 0x158   :  { %5724 = vmatmul.mubr.f32.gmra.mrb[2].mxu1 %v7141_v19 }
 0x159   :  { %5726 = vmatprep.mubr.f32.mxu1 %v7164_v33  ;;  %6339 = vmatpush3.bf16.msra.mxu1 %v7119_v53 }
 0x15a   :  { %6341 = vmatprep.subr.bf16.mxu1 %v7098_v21 }
 0x15c   :  { %5727 = vmatmul.mubr.f32.gmra.mrb[4].mxu1 %v7161_v27 }
 0x15d   :  { %5729 = vmatprep.mubr.f32.mxu1 %v7185_v57 }
 0x160   :  { %5730 = vmatmul.mubr.f32.gmra.mrb[6].mxu1 %v7178_v48 }
 0x161   :  { %5740 = vmatprep.mubr.f32.mxu1 %v7138_v11 }
 0x164   :  { %5741 = vmatmul.mubr.f32.vlgmr.msra.gmra.mrb[0].mxu1 %v7135_v8 }
 0x165   :  { %5743 = vmatprep.mubr.f32.mxu1 %v7155_v16  ;;  %6343 = vmatpush3.bf16.msra.mxu1 %v7098_v21 }
 0x166   :  { %6345 = vmatprep.subr.bf16.mxu1 %v7108_v28 }
 0x168   :  { %5744 = vmatmul.mubr.f32.gmra.mrb[2].mxu1 %v7149_v40 }
 0x169   :  { %5746 = vmatprep.mubr.f32.mxu1 %v7172_v45  ;;  %6347 = vmatpush3.bf16.msra.mxu1 %v7108_v28 }
 0x16a   :  { %6349 = vmatprep.subr.bf16.mxu1 %v7121_v54 }
 0x16c   :  { %5747 = vmatmul.mubr.f32.gmra.mrb[4].mxu1 %v7168_v39 }
 0x16d   :  { %5749 = vmatprep.mubr.f32.mxu1 %v1042_v63 }
 0x170   :  { %5750 = vmatmul.mubr.f32.gmra.mrb[6].mxu1 %v1052_v60 }
 0x171   :  { %5760 = vmatprep.mubr.f32.mxu1 %v983_v36 }
 0x174   :  { %5761 = vmatmul.mubr.f32.vlgmr.msra.gmra.mrb[0].mxu1 %v993_v30 }
 0x175   :  { %5763 = vmatprep.mubr.f32.mxu1 %v1003_v38  ;;  %6351 = vmatpush3.bf16.msra.mxu1 %v7121_v54  ;;  %v1708_v54 = vld [vmem:[%s8123_s5 + $0x10] sm:$0xff] }
 0x176   :  { %6353 = vmatprep.subr.bf16.mxu1 %v7123_v55 }
 0x178   :  { %5764 = vmatmul.mubr.f32.gmra.mrb[2].mxu1 %v1013_v43 }
 0x179   :  { %5766 = vmatprep.mubr.f32.mxu1 %v1023_v59  ;;  %6355 = vmatpush3.bf16.msra.mxu1 %v7123_v55  ;;  %v1709_v55 = vld [vmem:[%s8123_s5 + $0x18] sm:$0xff] }
 0x17a   :  { %6357 = vmatprep.subr.bf16.mxu1 %v7098_v21 }
 0x17c   :  { %5767 = vmatmul.mubr.f32.gmra.mrb[4].mxu1 %v1033_v56 }
 0x17d   :  { %5769 = vmatprep.mubr.f32.mxu1 %v1043_v44 }
 0x180   :  { %5770 = vmatmul.mubr.f32.gmra.mrb[6].mxu1 %v1053_v1 }
 0x181   :  { %5780 = vmatprep.mubr.f32.mxu1 %v7132_v6 }
 0x184   :  { %5781 = vmatmul.mubr.f32.vlgmr.msra.gmra.mrb[0].mxu1 %v7129_v3 }
 0x185   :  { %5783 = vmatprep.mubr.f32.mxu1 %v7145_v31  ;;  %6359 = vmatpush3.bf16.msra.mxu1 %v7098_v21  ;;  %v1706_v21 = vld [vmem:[%s8123_s5] sm:$0xff] }
 0x186   :  { %6361 = vmatprep.subr.bf16.mxu1 %v7108_v28  ;;  %v1742_v51 = vand.u32 4294901760, %v1706_v21 }
 0x188   :  { %5784 = vmatmul.mubr.f32.gmra.mrb[2].mxu1 %v7141_v19  ;;  %v1892_v11 = vsub.f32 %v1706_v21, %v1742_v51 }
 0x189   :  { %5786 = vmatprep.mubr.f32.mxu1 %v7164_v33  ;;  %6363 = vmatpush3.bf16.msra.mxu1 %v7108_v28  ;;  %v1707_v28 = vld [vmem:[%s8123_s5 + $0x8] sm:$0xff] }
 0x18a   :  { %v1745_v52 = vand.u32 4294901760, %v1707_v28  ;;  %v1893_v13 = vand.u32 4294901760, %v1892_v11 }
 0x18c   :  { %5787 = vmatmul.mubr.f32.gmra.mrb[4].mxu1 %v7161_v27  ;;  %v7255_v53 = vpack.c.bf16 %v1745_v52, %v1742_v51  ;;  %v1899_v12 = vsub.f32 %v1707_v28, %v1745_v52 }
 0x18d   :  { %5789 = vmatprep.mubr.f32.mxu1 %v7185_v57 }
 0x18e   :  { %6365 = vmatprep.subr.bf16.mxu0 %v7255_v53  ;;  %v1900_v18 = vand.u32 4294901760, %v1899_v12  ;;  %v7274_v25 = vpack.c.bf16 %v1899_v12, %v1892_v11 }
 0x18f   :  { %6367 = vmatpush3.bf16.msra.mxu0 %v7255_v53 }
 0x190   :  { %5790 = vmatmul.mubr.f32.gmra.mrb[6].mxu1 %v7178_v48  ;;  %v1901_v22 = vsub.f32 %v1899_v12, %v1900_v18 }
 0x191   :  { %5800 = vmatprep.mubr.f32.mxu1 %v7132_v6  ;;  %v1751_v6 = vand.u32 4294901760, %v1709_v55 }
 0x192   :  { %v1902_v34 = vand.u32 4294901760, %v1901_v22 }
 0x193   :  { %v1913_v30 = vsub.f32 %v1709_v55, %v1751_v6 }
 0x194   :  { %5801 = vmatmul.mubr.f32.vlgmr.msra.gmra.mrb[0].mxu1 %v7129_v3  ;;  %v1748_v3 = vand.u32 4294901760, %v1708_v54 }
 0x195   :  { %5803 = vmatprep.mubr.f32.mxu1 %v7145_v31  ;;  %v1914_v40 = vand.u32 4294901760, %v1913_v30 }
 0x196   :  { %v7265_v8 = vpack.c.bf16 %v1751_v6, %v1748_v3  ;;  %v1906_v23 = vsub.f32 %v1708_v54, %v1748_v3 }
 0x197   :  { %v1915_v15 = vsub.f32 %v1913_v30, %v1914_v40 }
 0x198   :  { %5804 = vmatmul.mubr.f32.gmra.mrb[2].mxu1 %v7141_v19  ;;  %6369 = vmatprep.subr.bf16.mxu0 %v7265_v8  ;;  %v1894_v19 = vsub.f32 %v1892_v11, %v1893_v13  ;;  %v1907_v36 = vand.u32 4294901760, %v1906_v23  ;;  %v7276_v26 = vpack.c.bf16 %v1913_v30, %v1906_v23 }
 0x199   :  { %5806 = vmatprep.mubr.f32.mxu1 %v7164_v33  ;;  %6371 = vmatpush3.bf16.msra.mxu0 %v7265_v8  ;;  %v1916_v20 = vand.u32 4294901760, %v1915_v15 }
 0x19a   :  { %v1895_v31 = vand.u32 4294901760, %v1894_v19  ;;  %v1908_v14 = vsub.f32 %v1906_v23, %v1907_v36  ;;  %v7280_v29 = vpack.c.bf16 %v1914_v40, %v1907_v36 }
 0x19c   :  { %5807 = vmatmul.mubr.f32.gmra.mrb[4].mxu1 %v7161_v27  ;;  %v7269_v17 = vpack.c.bf16 %v1902_v34, %v1895_v31  ;;  %v1909_v16 = vand.u32 4294901760, %v1908_v14  ;;  %v7278_v27 = vpack.c.bf16 %v1900_v18, %v1893_v13 }
 0x19d   :  { %5809 = vmatprep.mubr.f32.mxu1 %v7185_v57 }
 0x19e   :  { %6373 = vmatprep.subr.bf16.mxu0 %v7269_v17  ;;  %v7272_v24 = vpack.c.bf16 %v1916_v20, %v1909_v16 }
 0x1a0   :  { %5810 = vmatmul.mubr.f32.gmra.mrb[6].mxu1 %v7178_v48 }
 0x267   :  { %v5802_v33 = vpop.f32.mrb[0].mxu1 }
 0x268   :  { %v6516_v35 = vadd.f32 %v5802_v33, %v5149_v32  ;;  %v1652_v37 = vpop.f32.mrb[1].mxu1 }
 0x269   :  { %v6517_v38 = vadd.f32 %v5149_v32, %v1652_v37 }
 0x26a   :  { %v1699_v39 = vmax.f32 %v6516_v35, 0.0 }
 0x26b   :  { %v1698_v41 = vmax.f32 %v6517_v38, 0.0  ;;  %v5805_v42 = vpop.f32.mrb[2].mxu1 }
 0x26c   :  { %v1721_v43 = vsel %vm60_vm0, %v1699_v39, 0  ;;  %v6518_v45 = vadd.f32 %v5805_v42, %v5149_v32  ;;  %v1664_v46 = vpop.f32.mrb[3].mxu1 }
 0x26d   :  { %v7286_v47 = vand.u32 4294901760, %v1721_v43  ;;  %v1718_v48 = vsel %vm60_vm0, %v1698_v41, 0  ;;  %v6519_v49 = vadd.f32 %v5149_v32, %v1664_v46 }
 0x26e   :  { %v7289_v50 = vand.u32 4294901760, %v1718_v48  ;;  %v1701_v56 = vmax.f32 %v6518_v45, 0.0 }
 0x26f   :  { %v7292_v57 = vsub.f32 %v1721_v43, %v7286_v47  ;;  %v1700_v58 = vmax.f32 %v6519_v49, 0.0  ;;  %v5808_v59 = vpop.f32.mrb[4].mxu1 }
 0x270   :  { %v7295_v60 = vsub.f32 %v1718_v48, %v7289_v50  ;;  %v1727_v61 = vsel %vm60_vm0, %v1701_v56, 0  ;;  %v6520_v62 = vadd.f32 %v5808_v59, %v5149_v32  ;;  %v1676_v63 = vpop.f32.mrb[5].mxu1 }
 0x271   :  { %v1822_v0 = vand.u32 4294901760, %v7292_v57  ;;  %v7299_v1 = vand.u32 4294901760, %v1727_v61  ;;  %v1724_v2 = vsel %vm60_vm0, %v1700_v58, 0  ;;  %v6521_v44 = vadd.f32 %v5149_v32, %v1676_v63 }
 0x272   :  { %v7302_v4 = vand.u32 4294901760, %v1724_v2  ;;  %v1703_v5 = vmax.f32 %v6520_v62, 0.0  ;;  %v1812_v7 = vand.u32 4294901760, %v7295_v60 }
 0x273   :  { %v1823_v9 = vsub.f32 %v7292_v57, %v1822_v0  ;;  %v7309_v10 = vsub.f32 %v1727_v61, %v7299_v1  ;;  %v1702_v21 = vmax.f32 %v6521_v44, 0.0  ;;  %v5811_v28 = vpop.f32.mrb[6].mxu1 }
 0x274   :  { %v7312_v51 = vsub.f32 %v1724_v2, %v7302_v4  ;;  %v1733_v52 = vsel %vm60_vm0, %v1703_v5, 0  ;;  %v6522_v54 = vadd.f32 %v5811_v28, %v5149_v32  ;;  %v1688_v55 = vpop.f32.mrb[7].mxu1  ;;  %v1813_v3 = vsub.f32 %v7295_v60, %v1812_v7 }
 0x275   :  { %v7318_v6 = vand.u32 4294901760, %v1733_v52  ;;  %v1730_v11 = vsel %vm60_vm0, %v1702_v21, 0  ;;  %v6523_v12 = vadd.f32 %v5149_v32, %v1688_v55  ;;  %v1824_v23 = vand.u32 4294901760, %v1823_v9 }
 0x276   :  { %v7321_v13 = vand.u32 4294901760, %v1730_v11  ;;  %v1705_v18 = vmax.f32 %v6522_v54, 0.0  ;;  %v1814_v19 = vand.u32 4294901760, %v1813_v3  ;;  %v1832_v22 = vand.u32 4294901760, %v7312_v51  ;;  %v2634_v54 = vld [vmem:[%s8125_s8 + $0x10] sm:$0xff] }
 0x277   :  { %v7325_v30 = vsub.f32 %v1733_v52, %v7318_v6  ;;  %v1704_v31 = vmax.f32 %v6523_v12, 0.0  ;;  %v1842_v34 = vand.u32 4294901760, %v7309_v10  ;;  %v2633_v52 = vld [vmem:[%s8125_s8 + $0x8] sm:$0xff]  ;;  %v7456_v12 = vld [vmem:[%s8125_s8 + $0x20] sm:$0xff] }
 0x278   :  { %v7329_v36 = vsub.f32 %v1730_v11, %v7321_v13  ;;  %v1739_v40 = vsel %vm60_vm0, %v1705_v18, 0  ;;  %5820 = vmatprep.mubr.f32.mxu0 %v1814_v19  ;;  %v1833_v14 = vsub.f32 %v7312_v51, %v1832_v22  ;;  %v2675_v3 = vand.u32 4294901760, %v2633_v52 }
 0x279   :  { %v7335_v15 = vand.u32 4294901760, %v1739_v40  ;;  %v1736_v16 = vsel %vm60_vm0, %v1704_v31, 0  ;;  %5821 = vmatmul.mubr.f32.vlgmr.msra.gmra.mrb[8].mxu0 %v1824_v23  ;;  %v1843_v20 = vsub.f32 %v7309_v10, %v1842_v34  ;;  %v1862_v32 = vand.u32 4294901760, %v7325_v30  ;;  %v7468_v23 = vld [vmem:[%s8125_s8 + $0x30] sm:$0xff]  ;;  %v2625_v31 = vld [vmem:[%s8126_s1 + $0x8] sm:$0xff] }
 0x27a   :  { %v7342_v33 = vand.u32 4294901760, %v1736_v16  ;;  %6375 = vmatpush3.bf16.msra.mxu0 %v7269_v17  ;;  %v1834_v35 = vand.u32 4294901760, %v1833_v14  ;;  %v1852_v37 = vand.u32 4294901760, %v7329_v36  ;;  %v2678_v11 = vand.u32 4294901760, %v2634_v54 }
 0x27b   :  { %v1881_v38 = vsub.f32 %v1739_v40, %v7335_v15  ;;  %v1844_v39 = vand.u32 4294901760, %v1843_v20  ;;  %v1863_v41 = vsub.f32 %v7325_v30, %v1862_v32  ;;  %6377 = vmatprep.subr.bf16.mxu0 %v7272_v24  ;;  %v2684_v19 = vand.u32 4294901760, %v7456_v12 }
 0x27c   :  { %v1871_v42 = vsub.f32 %v1736_v16, %v7342_v33  ;;  %5823 = vmatprep.mubr.f32.mxu0 %v1834_v35  ;;  %v1853_v43 = vsub.f32 %v7329_v36, %v1852_v37  ;;  %v2651_v14 = vsel %vm2646_vm2, %v2625_v31, 0  ;;  %v2627_v16 = vld [vmem:[%s8126_s1 + $0x18] sm:$0xff] }
 0x27d   :  { %5824 = vmatmul.mubr.f32.gmra.mrb[10].mxu0 %v1844_v39  ;;  %v1882_v45 = vand.u32 4294901760, %v1881_v38  ;;  %v1864_v48 = vand.u32 4294901760, %v1863_v41  ;;  %v7499_v35 = vand.u32 4294901760, %v2651_v14  ;;  %v2657_v41 = vsel %vm2646_vm2, %v2627_v16, 0 }
 0x27e   :  { %v1854_v46 = vand.u32 4294901760, %v1853_v43  ;;  %6379 = vmatpush3.bf16.msra.mxu0 %v7272_v24  ;;  %v1872_v17 = vand.u32 4294901760, %v1871_v42 }
 0x27f   :  { %v1883_v49 = vsub.f32 %v1881_v38, %v1882_v45  ;;  %6381 = vmatprep.subr.bf16.mxu0 %v7274_v25  ;;  %v7513_v43 = vsub.f32 %v2651_v14, %v7499_v35 }
 0x280   :  { %5826 = vmatprep.mubr.f32.mxu0 %v1854_v46  ;;  %v1873_v56 = vsub.f32 %v1871_v42, %v1872_v17  ;;  %v7517_v46 = vand.u32 4294901760, %v2657_v41 }
 0x281   :  { %5827 = vmatmul.mubr.f32.gmra.mrb[12].mxu0 %v1864_v48  ;;  %v1884_v59 = vand.u32 4294901760, %v1883_v49  ;;  %v7522_v49 = vsub.f32 %v2634_v54, %v2678_v11 }
 0x282   :  { %v1874_v58 = vand.u32 4294901760, %v1873_v56 }
 0x284   :  { %5829 = vmatprep.mubr.f32.mxu0 %v1874_v58 }
 0x285   :  { %5830 = vmatmul.mubr.f32.gmra.mrb[14].mxu0 %v1884_v59  ;;  %v2755_v59 = vand.u32 4294901760, %v7513_v43 }
 0x286   :  { %5840 = vmatprep.mubr.f32.mxu0 %v7289_v50 }
 0x289   :  { %5841 = vmatmul.mubr.f32.vlgmr.msra.gmra.mrb[8].mxu0 %v7286_v47 }
 0x28a   :  { %5843 = vmatprep.mubr.f32.mxu0 %v7302_v4  ;;  %6383 = vmatpush3.bf16.msra.mxu0 %v7274_v25 }
 0x28b   :  { %6385 = vmatprep.subr.bf16.mxu0 %v7276_v26 }
 0x28d   :  { %5844 = vmatmul.mubr.f32.gmra.mrb[10].mxu0 %v7299_v1 }
 0x28e   :  { %5846 = vmatprep.mubr.f32.mxu0 %v7321_v13  ;;  %6387 = vmatpush3.bf16.msra.mxu0 %v7276_v26 }
 0x28f   :  { %6389 = vmatprep.subr.bf16.mxu0 %v7255_v53 }
 0x291   :  { %5847 = vmatmul.mubr.f32.gmra.mrb[12].mxu0 %v7318_v6 }
 0x292   :  { %5849 = vmatprep.mubr.f32.mxu0 %v7342_v33 }
 0x295   :  { %5850 = vmatmul.mubr.f32.gmra.mrb[14].mxu0 %v7335_v15 }
 0x296   :  { %5860 = vmatprep.mubr.f32.mxu0 %v7295_v60 }
 0x299   :  { %5861 = vmatmul.mubr.f32.vlgmr.msra.gmra.mrb[8].mxu0 %v7292_v57 }
 0x29a   :  { %5863 = vmatprep.mubr.f32.mxu0 %v7312_v51  ;;  %6391 = vmatpush3.bf16.msra.mxu0 %v7255_v53  ;;  %v2632_v51 = vld [vmem:[%s8125_s8] sm:$0xff] }
 0x29b   :  { %6393 = vmatprep.subr.bf16.mxu0 %v7265_v8  ;;  %v2672_v55 = vand.u32 4294901760, %v2632_v51 }
 0x29d   :  { %5864 = vmatmul.mubr.f32.gmra.mrb[10].mxu0 %v7309_v10 }
 0x29e   :  { %5866 = vmatprep.mubr.f32.mxu0 %v7329_v36  ;;  %6395 = vmatpush3.bf16.msra.mxu0 %v7265_v8  ;;  %v7479_v36 = vand.u32 4294901760, %v7468_v23 }
 0x29f   :  { %6397 = vmatprep.subr.bf16.mxu0 %v7278_v27 }
 0x2a1   :  { %5867 = vmatmul.mubr.f32.gmra.mrb[12].mxu0 %v7325_v30  ;;  %v2624_v30 = vld [vmem:[%s8126_s1] sm:$0xff] }
 0x2a2   :  { %5869 = vmatprep.mubr.f32.mxu0 %v1871_v42  ;;  %v2648_v40 = vsel %vm2646_vm2, %v2624_v30, 0 }
 0x2a5   :  { %5870 = vmatmul.mubr.f32.gmra.mrb[14].mxu0 %v1881_v38  ;;  %v7504_v38 = vsub.f32 %v2633_v52, %v2675_v3 }
 0x2a6   :  { %5880 = vmatprep.mubr.f32.mxu0 %v1812_v7 }
 0x2a7   :  { %v2833_v48 = vand.u32 4294901760, %v7504_v38 }
 0x2a9   :  { %5881 = vmatmul.mubr.f32.vlgmr.msra.gmra.mrb[8].mxu0 %v1822_v0 }
 0x2aa   :  { %5883 = vmatprep.mubr.f32.mxu0 %v1832_v22  ;;  %6399 = vmatpush3.bf16.msra.mxu0 %v7278_v27 }
 0x2ab   :  { %6401 = vmatprep.subr.bf16.mxu0 %v7280_v29 }
 0x2ad   :  { %5884 = vmatmul.mubr.f32.gmra.mrb[10].mxu0 %v1842_v34  ;;  %v7476_v34 = vpack.c.bf16 %v2675_v3, %v2672_v55 }
 0x2ae   :  { %5886 = vmatprep.mubr.f32.mxu0 %v1852_v37  ;;  %6403 = vmatpush3.bf16.msra.mxu0 %v7280_v29  ;;  %v7502_v37 = vsub.f32 %v2632_v51, %v2672_v55 }
 0x2af   :  { %6405 = vmatprep.subr.bf16.mxu0 %v7255_v53  ;;  %6413 = vmatprep.subr.bf16.mxu1 %v7476_v34 }
 0x2b0   :  { %6415 = vmatpush3.bf16.msra.mxu1 %v7476_v34 }
 0x2b1   :  { %5887 = vmatmul.mubr.f32.gmra.mrb[12].mxu0 %v1862_v32 }
 0x2b2   :  { %5889 = vmatprep.mubr.f32.mxu0 %v1872_v17  ;;  %v2826_v17 = vand.u32 4294901760, %v7502_v37 }
 0x2b5   :  { %5890 = vmatmul.mubr.f32.gmra.mrb[14].mxu0 %v1882_v45 }
 0x2b6   :  { %5900 = vmatprep.mubr.f32.mxu0 %v7289_v50 }
 0x2b9   :  { %5901 = vmatmul.mubr.f32.vlgmr.msra.gmra.mrb[8].mxu0 %v7286_v47 }
 0x2ba   :  { %5903 = vmatprep.mubr.f32.mxu0 %v7302_v4  ;;  %6407 = vmatpush3.bf16.msra.mxu0 %v7255_v53  ;;  %v5150_v53 = vld [vmem:[%s8124_s7] ss:$0 sm:$0xff] }
 0x2bb   :  { %6409 = vmatprep.subr.bf16.mxu0 %v7265_v8 }
 0x2bd   :  { %5904 = vmatmul.mubr.f32.gmra.mrb[10].mxu0 %v7299_v1 }
 0x2be   :  { %5906 = vmatprep.mubr.f32.mxu0 %v7321_v13  ;;  %6411 = vmatpush3.bf16.msra.mxu0 %v7265_v8 }
 0x2c1   :  { %5907 = vmatmul.mubr.f32.gmra.mrb[12].mxu0 %v7318_v6 }
 0x2c2   :  { %5909 = vmatprep.mubr.f32.mxu0 %v7342_v33 }
 0x2c5   :  { %5910 = vmatmul.mubr.f32.gmra.mrb[14].mxu0 %v7335_v15 }
 0x2c6   :  { %5920 = vmatprep.mubr.f32.mxu0 %v7289_v50 }
 0x2c9   :  { %5921 = vmatmul.mubr.f32.vlgmr.msra.gmra.mrb[8].mxu0 %v7286_v47 }
 0x2ca   :  { %5923 = vmatprep.mubr.f32.mxu0 %v7302_v4 }
 0x2cd   :  { %5924 = vmatmul.mubr.f32.gmra.mrb[10].mxu0 %v7299_v1 }
 0x2ce   :  { %5926 = vmatprep.mubr.f32.mxu0 %v7321_v13  ;;  %v7461_v13 = vld [vmem:[%s8125_s8 + $0x28] sm:$0xff] }
 0x2cf   :  { %v2687_v22 = vand.u32 4294901760, %v7461_v13 }
 0x2d1   :  { %5927 = vmatmul.mubr.f32.gmra.mrb[12].mxu0 %v7318_v6  ;;  %v2635_v6 = vld [vmem:[%s8125_s8 + $0x18] sm:$0xff]  ;;  %v7495_v32 = vpack.c.bf16 %v2687_v22, %v2684_v19 }
 0x2d2   :  { %5929 = vmatprep.mubr.f32.mxu0 %v7342_v33  ;;  %v2681_v18 = vand.u32 4294901760, %v2635_v6  ;;  %v7497_v33 = vand.u32 4294901760, %v2648_v40 }
 0x2d4   :  { %v7489_v20 = vpack.c.bf16 %v2681_v18, %v2678_v11  ;;  %v7510_v42 = vsub.f32 %v2648_v40, %v7497_v33  ;;  %v7524_v56 = vsub.f32 %v2635_v6, %v2681_v18  ;;  %v2630_v11 = vld [vmem:[%s8126_s1 + $0x30] sm:$0xff]  ;;  %v2631_v18 = vld [vmem:[%s8126_s1 + $0x38] sm:$0xff] }
 0x2d5   :  { %5930 = vmatmul.mubr.f32.gmra.mrb[14].mxu0 %v7335_v15  ;;  %v2626_v15 = vld [vmem:[%s8126_s1 + $0x10] sm:$0xff] }
 0x2d6   :  { %v2654_v39 = vsel %vm2646_vm2, %v2626_v15, 0  ;;  %6417 = vmatprep.subr.bf16.mxu1 %v7489_v20  ;;  %v2745_v58 = vand.u32 4294901760, %v7510_v42 }
 0x2d7   :  { %v7515_v45 = vand.u32 4294901760, %v2654_v39  ;;  %6419 = vmatpush3.bf16.msra.mxu1 %v7489_v20 }
 0x2d8   :  { %6421 = vmatprep.subr.bf16.mxu1 %v7495_v32 }
 0x2db   :  { %6423 = vmatpush3.bf16.msra.mxu1 %v7495_v32 }
 0x2dc   :  { %5944 = vmatprep.subr.mxu1 %v7479_v36 }
 0x2df   :  { %5945 = vmatpush3.msra.mxu1 %v7479_v36 }
 0x39c   :  { %v5922_v8 = vpop.f32.mrb[8].mxu0 }
 0x39d   :  { %v2481_v24 = vpop.f32.mrb[9].mxu0  ;;  %v7411_v26 = vadd.f32 %v5922_v8, %v5150_v53  ;;  %v7532_v8 = vsub.f32 %v2657_v41, %v7517_v46  ;;  %v7592_v41 = vsub.f32 %v7461_v13, %v2687_v22 }
 0x39e   :  { %v7409_v25 = vadd.f32 %v5150_v53, %v2481_v24  ;;  %v2827_v24 = vsub.f32 %v7502_v37, %v2826_v17 }
 0x39f   :  { %v2531_v62 = vsel %vm2527_vm1, %v7411_v26, -inf }
 0x3a0   :  { %v5925_v27 = vpop.f32.mrb[10].mxu0  ;;  %v2528_v29 = vsel %vm2527_vm1, %v7409_v25, -inf }
 0x3a1   :  { %v2493_v47 = vpop.f32.mrb[11].mxu0  ;;  %2529 = vmax.xlane.f32.xlu0 %v2528_v29  ;;  %v7417_v57 = vadd.f32 %v5925_v27, %v5150_v53  ;;  %v2834_v27 = vsub.f32 %v7504_v38, %v2833_v48  ;;  %v2840_v29 = vand.u32 4294901760, %v7522_v49 }
 0x3a2   :  { %v7415_v50 = vadd.f32 %v5150_v53, %v2493_v47  ;;  %v2847_v47 = vand.u32 4294901760, %v7524_v56 }
 0x3a3   :  { %v2537_v44 = vsel %vm2527_vm1, %v7417_v57, -inf }
 0x3a4   :  { %v5928_v60 = vpop.f32.mrb[12].mxu0  ;;  %v2534_v61 = vsel %vm2527_vm1, %v7415_v50, -inf }
 0x3a5   :  { %v2505_v63 = vpop.f32.mrb[13].mxu0  ;;  %2535 = vmax.xlane.f32.xlu1 %v2534_v61  ;;  %2532 = vmax.xlane.f32.xlu0 %v2531_v62  ;;  %v7425_v1 = vadd.f32 %v5928_v60, %v5150_v53  ;;  %v2746_v60 = vsub.f32 %v7510_v42, %v2745_v58  ;;  %v2756_v61 = vsub.f32 %v7513_v43, %v2755_v59 }
 0x3a6   :  { %v7423_v0 = vadd.f32 %v5150_v53, %v2505_v63  ;;  %v2775_v63 = vand.u32 4294901760, %v7532_v8 }
 0x3a7   :  { %v2543_v10 = vsel %vm2527_vm1, %v7425_v1, -inf  ;;  %v2757_v51 = vand.u32 4294901760, %v2756_v61  ;;  %v2867_v61 = vsub.f32 %v7468_v23, %v7479_v36 }
 0x3a8   :  { %v5931_v2 = vpop.f32.mrb[14].mxu0  ;;  %v2540_v4 = vsel %vm2527_vm1, %v7423_v0, -inf  ;;  %v2776_v54 = vsub.f32 %v7532_v8, %v2775_v63 }
 0x3a9   :  { %v2517_v5 = vpop.f32.mrb[15].mxu0  ;;  %2538 = vmax.xlane.f32.xlu1 %v2537_v44  ;;  %2541 = vmax.xlane.f32.xlu0 %v2540_v4  ;;  %v7433_v9 = vadd.f32 %v5931_v2, %v5150_v53  ;;  %v2628_v2 = vld [vmem:[%s8126_s1 + $0x20] sm:$0xff]  ;;  %v2828_v44 = vand.u32 4294901760, %v2827_v24  ;;  %v2835_v4 = vand.u32 4294901760, %v2834_v27  ;;  %v2666_v27 = vsel %vm2646_vm2, %v2630_v11, 0 }
 0x3aa   :  { %v7431_v7 = vadd.f32 %v5150_v53, %v2517_v5  ;;  %v7529_v53 = vsub.f32 %v2654_v39, %v7515_v45  ;;  %v2841_v5 = vsub.f32 %v7522_v49, %v2840_v29  ;;  %v2660_v6 = vsel %vm2646_vm2, %v2628_v2, 0 }
 0x3ab   :  { %v2549_v28 = vsel %vm2527_vm1, %v7433_v9, -inf  ;;  %v6424_v30 = vpack.c.bf16 %v2835_v4, %v2828_v44  ;;  %v7578_v40 = vand.u32 4294901760, %v2660_v6  ;;  %v7587_v39 = vsub.f32 %v7456_v12, %v2684_v19 }
 0x3ac   :  { %v2546_v21 = vsel %vm2527_vm1, %v7431_v7, -inf  ;;  %v2765_v62 = vand.u32 4294901760, %v7529_v53  ;;  %v2842_v55 = vand.u32 4294901760, %v2841_v5  ;;  %v2861_v19 = vand.u32 4294901760, %v7592_v41 }
 0x3ad   :  { %2544 = vmax.xlane.f32.xlu1 %v2543_v10  ;;  %2547 = vmax.xlane.f32.xlu0 %v2546_v21  ;;  %v2848_v10 = vsub.f32 %v7524_v56, %v2847_v47  ;;  %v2629_v21 = vld [vmem:[%s8126_s1 + $0x28] sm:$0xff]  ;;  %v7595_v24 = vsub.f32 %v2660_v6, %v7578_v40  ;;  %v2854_v12 = vand.u32 4294901760, %v7587_v39  ;;  %v7606_v44 = vand.u32 4294901760, %v2666_v27 }
 0x3ae   :  { %v2766_v52 = vsub.f32 %v7529_v53, %v2765_v62  ;;  %v2663_v14 = vsel %vm2646_vm2, %v2629_v21, 0  ;;  %v2777_v13 = vand.u32 4294901760, %v2776_v54  ;;  %v7612_v5 = vand.u32 4294901760, %v2867_v61  ;;  %6425 = vmatprep.subr.bf16.mxu1 %v6424_v30 }
 0x3af   :  { %v2849_v3 = vand.u32 4294901760, %v2848_v10  ;;  %v7582_v16 = vand.u32 4294901760, %v2663_v14  ;;  %v2785_v22 = vand.u32 4294901760, %v7595_v24  ;;  %v2855_v10 = vsub.f32 %v7587_v39, %v2854_v12 }
 0x3b0   :  { %v2767_v31 = vand.u32 4294901760, %v2766_v52  ;;  %v2862_v21 = vsub.f32 %v7592_v41, %v2861_v19  ;;  %v2869_v54 = vsub.f32 %v2867_v61, %v7612_v5 }
 0x3b1   :  { %2550 = vmax.xlane.f32.xlu1 %v2549_v28  ;;  %v2747_v28 = vand.u32 4294901760, %v2746_v60  ;;  %v6428_v15 = vpack.c.bf16 %v2849_v3, %v2842_v55  ;;  %v2669_v60 = vsel %vm2646_vm2, %v2631_v18, 0  ;;  %v7602_v2 = vsub.f32 %v2663_v14, %v7582_v16 }
 0x3b2   :  { %v7610_v4 = vand.u32 4294901760, %v2669_v60  ;;  %v2856_v3 = vand.u32 4294901760, %v2855_v10  ;;  %v2863_v6 = vand.u32 4294901760, %v2862_v21  ;;  %v2870_v21 = vand.u32 4294901760, %v2869_v54 }
 0x3b3   :  { %5946 = vmatprep.mubr.f32.mxu1 %v2747_v28  ;;  %v2795_v23 = vand.u32 4294901760, %v7602_v2  ;;  %v7622_v28 = vsub.f32 %v2666_v27, %v7606_v44  ;;  %v6444_v54 = vpack.c.bf16 %v7592_v41, %v7587_v39 }
 0x3b4   :  { %5947 = vmatmul.mubr.f32.vlgmr.msra.gmra.mrb[8].mxu1 %v2757_v51  ;;  %v2786_v51 = vsub.f32 %v7595_v24, %v2785_v22  ;;  %v7628_v52 = vsub.f32 %v2669_v60, %v7610_v4  ;;  %v6432_v14 = vpack.c.bf16 %v2863_v6, %v2856_v3 }
 0x3b5   :  { %5949 = vmatprep.mubr.f32.mxu1 %v2767_v31  ;;  %6427 = vmatpush3.bf16.msra.mxu1 %v6424_v30  ;;  %v2796_v55 = vsub.f32 %v7602_v2, %v2795_v23  ;;  %v2805_v11 = vand.u32 4294901760, %v7622_v28 }
 0x3b6   :  { %6429 = vmatprep.subr.bf16.mxu1 %v6428_v15  ;;  %v2787_v18 = vand.u32 4294901760, %v2786_v51  ;;  %v2815_v30 = vand.u32 4294901760, %v7628_v52 }
 0x3b7   :  { %v2797_v31 = vand.u32 4294901760, %v2796_v55  ;;  %v2806_v27 = vsub.f32 %v7622_v28, %v2805_v11  ;;  %v6464_v55 = vpack.c.bf16 %v2847_v47, %v2840_v29 }
 0x3b8   :  { %5950 = vmatmul.mubr.f32.gmra.mrb[10].mxu1 %v2777_v13  ;;  %v2816_v60 = vsub.f32 %v7628_v52, %v2815_v30  ;;  %v6436_v13 = vpack.c.bf16 %v7504_v38, %v7502_v37  ;;  %v6468_v37 = vpack.c.bf16 %v2861_v19, %v2854_v12 }
 0x3b9   :  { %5952 = vmatprep.mubr.f32.mxu1 %v2787_v18  ;;  %6431 = vmatpush3.bf16.msra.mxu1 %v6428_v15  ;;  %v2807_v10 = vand.u32 4294901760, %v2806_v27  ;;  %v6440_v15 = vpack.c.bf16 %v7524_v56, %v7522_v49 }
 0x3ba   :  { %6433 = vmatprep.subr.bf16.mxu1 %v6432_v14  ;;  %v2817_v51 = vand.u32 4294901760, %v2816_v60 }
 0x3bc   :  { %5953 = vmatmul.mubr.f32.gmra.mrb[12].mxu1 %v2797_v31 }
 0x3bd   :  { %5955 = vmatprep.mubr.f32.mxu1 %v2807_v10  ;;  %6435 = vmatpush3.bf16.msra.mxu1 %v6432_v14 }
 0x3be   :  { %5970 = vmatprep.subr.mxu1 %v2870_v21 }
 0x3c0   :  { %5956 = vmatmul.mubr.f32.gmra.mrb[14].mxu1 %v2817_v51 }
 0x3c1   :  { %5971 = vmatpush3.msra.mxu1 %v2870_v21  ;;  %5972 = vmatprep.mubr.f32.mxu1 %v7497_v33 }
 0x3c2   :  { %6437 = vmatprep.subr.bf16.mxu1 %v6436_v13 }
 0x3c4   :  { %5973 = vmatmul.mubr.f32.vlgmr.msra.gmra.mrb[8].mxu1 %v7499_v35 }
 0x3c5   :  { %5975 = vmatprep.mubr.f32.mxu1 %v7515_v45  ;;  %6439 = vmatpush3.bf16.msra.mxu1 %v6436_v13 }
 0x3c6   :  { %6441 = vmatprep.subr.bf16.mxu1 %v6440_v15 }
 0x3c8   :  { %5976 = vmatmul.mubr.f32.gmra.mrb[10].mxu1 %v7517_v46 }
 0x3c9   :  { %5978 = vmatprep.mubr.f32.mxu1 %v7578_v40  ;;  %6443 = vmatpush3.bf16.msra.mxu1 %v6440_v15 }
 0x3ca   :  { %6445 = vmatprep.subr.bf16.mxu1 %v6444_v54 }
 0x3cc   :  { %5979 = vmatmul.mubr.f32.gmra.mrb[12].mxu1 %v7582_v16 }
 0x3cd   :  { %5981 = vmatprep.mubr.f32.mxu1 %v7606_v44  ;;  %6447 = vmatpush3.bf16.msra.mxu1 %v6444_v54 }
 0x3ce   :  { %5996 = vmatprep.subr.mxu1 %v2867_v61 }
 0x3d0   :  { %5982 = vmatmul.mubr.f32.gmra.mrb[14].mxu1 %v7610_v4 }
 0x3d1   :  { %5997 = vmatpush3.msra.mxu1 %v2867_v61  ;;  %5998 = vmatprep.mubr.f32.mxu1 %v7510_v42  ;;  %v6460_v61 = vpack.c.bf16 %v2833_v48, %v2826_v17 }
 0x3d2   :  { %6449 = vmatprep.subr.bf16.mxu1 %v7476_v34 }
 0x3d4   :  { %5999 = vmatmul.mubr.f32.vlgmr.msra.gmra.mrb[8].mxu1 %v7513_v43 }
 0x3d5   :  { %6001 = vmatprep.mubr.f32.mxu1 %v7529_v53  ;;  %6451 = vmatpush3.bf16.msra.mxu1 %v7476_v34 }
 0x3d6   :  { %6453 = vmatprep.subr.bf16.mxu1 %v7489_v20 }
 0x3d8   :  { %6002 = vmatmul.mubr.f32.gmra.mrb[10].mxu1 %v7532_v8 }
 0x3d9   :  { %6004 = vmatprep.mubr.f32.mxu1 %v7595_v24  ;;  %6455 = vmatpush3.bf16.msra.mxu1 %v7489_v20 }
 0x3da   :  { %6457 = vmatprep.subr.bf16.mxu1 %v7495_v32 }
 0x3dc   :  { %6005 = vmatmul.mubr.f32.gmra.mrb[12].mxu1 %v7602_v2 }
 0x3dd   :  { %6007 = vmatprep.mubr.f32.mxu1 %v7622_v28  ;;  %6459 = vmatpush3.bf16.msra.mxu1 %v7495_v32 }
 0x3de   :  { %6022 = vmatprep.subr.mxu1 %v7479_v36 }
 0x3e0   :  { %6008 = vmatmul.mubr.f32.gmra.mrb[14].mxu1 %v7628_v52 }
 0x3e1   :  { %6023 = vmatpush3.msra.mxu1 %v7479_v36  ;;  %6024 = vmatprep.mubr.f32.mxu1 %v2745_v58 }
 0x3e2   :  { %6461 = vmatprep.subr.bf16.mxu1 %v6460_v61 }
 0x3e4   :  { %6025 = vmatmul.mubr.f32.vlgmr.msra.gmra.mrb[8].mxu1 %v2755_v59 }
 0x3e5   :  { %6027 = vmatprep.mubr.f32.mxu1 %v2765_v62  ;;  %6463 = vmatpush3.bf16.msra.mxu1 %v6460_v61 }
 0x3e6   :  { %6465 = vmatprep.subr.bf16.mxu1 %v6464_v55 }
 0x3e8   :  { %6028 = vmatmul.mubr.f32.gmra.mrb[10].mxu1 %v2775_v63 }
 0x3e9   :  { %6030 = vmatprep.mubr.f32.mxu1 %v2785_v22  ;;  %6467 = vmatpush3.bf16.msra.mxu1 %v6464_v55  ;;  %v3544_v22 = vld [vmem:[%s8127_s10] sm:$0x3] }
 0x3ea   :  { %6469 = vmatprep.subr.bf16.mxu1 %v6468_v37 }
 0x3ec   :  { %6031 = vmatmul.mubr.f32.gmra.mrb[12].mxu1 %v2795_v23 }
 0x3ed   :  { %6033 = vmatprep.mubr.f32.mxu1 %v2805_v11  ;;  %6471 = vmatpush3.bf16.msra.mxu1 %v6468_v37 }
 0x3ee   :  { %6048 = vmatprep.subr.mxu1 %v7612_v5 }
 0x3f0   :  { %6034 = vmatmul.mubr.f32.gmra.mrb[14].mxu1 %v2815_v30 }
 0x3f1   :  { %6049 = vmatpush3.msra.mxu1 %v7612_v5  ;;  %6050 = vmatprep.mubr.f32.mxu1 %v7497_v33 }
 0x3f2   :  { %6473 = vmatprep.subr.bf16.mxu1 %v7476_v34 }
 0x3f4   :  { %6051 = vmatmul.mubr.f32.vlgmr.msra.gmra.mrb[8].mxu1 %v7499_v35 }
 0x3f5   :  { %6053 = vmatprep.mubr.f32.mxu1 %v7515_v45  ;;  %6475 = vmatpush3.bf16.msra.mxu1 %v7476_v34 }
 0x3f6   :  { %6477 = vmatprep.subr.bf16.mxu1 %v7489_v20 }
 0x3f8   :  { %6054 = vmatmul.mubr.f32.gmra.mrb[10].mxu1 %v7517_v46 }
 0x3f9   :  { %6056 = vmatprep.mubr.f32.mxu1 %v7578_v40  ;;  %6479 = vmatpush3.bf16.msra.mxu1 %v7489_v20 }
 0x3fa   :  { %6481 = vmatprep.subr.bf16.mxu1 %v7495_v32 }
 0x3fc   :  { %6057 = vmatmul.mubr.f32.gmra.mrb[12].mxu1 %v7582_v16 }
 0x3fd   :  { %6059 = vmatprep.mubr.f32.mxu1 %v7606_v44  ;;  %6483 = vmatpush3.bf16.msra.mxu1 %v7495_v32 }
 0x3fe   :  { %6074 = vmatprep.subr.mxu1 %v7479_v36 }
 0x400   :  { %6060 = vmatmul.mubr.f32.gmra.mrb[14].mxu1 %v7610_v4 }
 0x401   :  { %6075 = vmatpush3.msra.mxu1 %v7479_v36  ;;  %6076 = vmatprep.mubr.f32.mxu1 %v7497_v33 }
 0x404   :  { %6077 = vmatmul.mubr.f32.vlgmr.msra.gmra.mrb[8].mxu1 %v7499_v35 }
 0x405   :  { %6079 = vmatprep.mubr.f32.mxu1 %v7515_v45 }
 0x408   :  { %6080 = vmatmul.mubr.f32.gmra.mrb[10].mxu1 %v7517_v46 }
 0x409   :  { %6082 = vmatprep.mubr.f32.mxu1 %v7578_v40 }
 0x40c   :  { %6083 = vmatmul.mubr.f32.gmra.mrb[12].mxu1 %v7582_v16 }
 0x40d   :  { %6085 = vmatprep.mubr.f32.mxu1 %v7606_v44 }
 0x410   :  { %6086 = vmatmul.mubr.f32.gmra.mrb[14].mxu1 %v7610_v4  ;;  %v3571_v4 = vsel %vm3569_vm3, %v3544_v22, 0 }
 0x411   :  { %v7760_v5 = vand.u32 4294901760, %v3571_v4 }
 0x413   :  { %6088 = vmatprep.subr.mxu0 %v7760_v5  ;;  %v7765_v23 = vsub.f32 %v3571_v4, %v7760_v5 }
 0x414   :  { %6089 = vmatpush3.msra.mxu0 %v7760_v5 }
 0x415   :  { %v7768_v28 = vand.u32 4294901760, %v7765_v23 }
 0x417   :  { %v3723_v52 = vsub.f32 %v7765_v23, %v7768_v28 }
 0x419   :  { %v7772_v3 = vand.u32 4294901760, %v3723_v52 }
 0x41b   :  { %6102 = vmatprep.subr.mxu0 %v7772_v3 }
 0x42e   :  { %v2530_v38 = vpop.xlane.xlu0 %2529 }
 0x42f   :  { %v2552_v34 = vsub.f32 %v7409_v25, %v2530_v38 }
 0x431   :  { %v2560_v42 = vmul.f32 1.442695, %v2552_v34 }
 0x432   :  { %v2536_v20 = vpop.xlane.xlu1 %2535  ;;  %v2533_v43 = vpop.xlane.xlu0 %2532 }
 0x433   :  { %6780 = vpow2.f32 %v2560_v42  ;;  %v2554_v17 = vsub.f32 %v7415_v50, %v2536_v20  ;;  %v2553_v48 = vsub.f32 %v7411_v26, %v2533_v43 }
 0x435   :  { %v2564_v32 = vmul.f32 1.442695, %v2554_v17  ;;  %v2562_v49 = vmul.f32 1.442695, %v2553_v48 }
 0x436   :  { %v2539_v25 = vpop.xlane.xlu1 %2538  ;;  %v2542_v56 = vpop.xlane.xlu0 %2541 }
 0x437   :  { %6782 = vpow2.f32 %v2564_v32  ;;  %v2555_v36 = vsub.f32 %v7417_v57, %v2539_v25  ;;  %v2556_v33 = vsub.f32 %v7423_v0, %v2542_v56 }
 0x438   :  { %6784 = vpow2.f32 %v2562_v49 }
 0x439   :  { %v2566_v58 = vmul.f32 1.442695, %v2555_v36  ;;  %v2568_v50 = vmul.f32 1.442695, %v2556_v33 }
 0x43a   :  { %v2545_v26 = vpop.xlane.xlu1 %2544  ;;  %v2548_v35 = vpop.xlane.xlu0 %2547 }
 0x43b   :  { %6786 = vpow2.f32 %v2566_v58  ;;  %v2557_v59 = vsub.f32 %v7425_v1, %v2545_v26  ;;  %v2558_v45 = vsub.f32 %v7431_v7, %v2548_v35 }
 0x43c   :  { %6788 = vpow2.f32 %v2568_v50 }
 0x43d   :  { %v6781_v57 = vpop.eup %6780  ;;  %v2570_v53 = vmul.f32 1.442695, %v2557_v59  ;;  %v2572_v0 = vmul.f32 1.442695, %v2558_v45 }
 0x43e   :  { %v2551_v46 = vpop.xlane.xlu1 %2550  ;;  %v2576_v8 = vsel %vm2527_vm1, %v6781_v57, 0.0 }
 0x43f   :  { %6790 = vpow2.f32 %v2570_v53  ;;  %v2559_v29 = vsub.f32 %v7433_v9, %v2551_v46  ;;  %2577 = vadd.xlane.f32.xlu0 %v2576_v8 }
 0x440   :  { %6792 = vpow2.f32 %v2572_v0 }
 0x441   :  { %v6783_v1 = vpop.eup %6782  ;;  %v2574_v7 = vmul.f32 1.442695, %v2559_v29 }
 0x442   :  { %v6785_v47 = vpop.eup %6784  ;;  %v2582_v62 = vsel %vm2527_vm1, %v6783_v1, 0.0 }
 0x443   :  { %6794 = vpow2.f32 %v2574_v7  ;;  %2583 = vadd.xlane.f32.xlu0 %v2582_v62  ;;  %v2579_v63 = vsel %vm2527_vm1, %v6785_v47, 0.0 }
 0x444   :  { %2580 = vadd.xlane.f32.xlu1 %v2579_v63 }
 0x445   :  { %v7737_v40 = vpop.eup %6786 }
 0x446   :  { %v7739_v16 = vpop.eup %6788  ;;  %v2585_v9 = vsel %vm2527_vm1, %v7737_v40, 0.0 }
 0x447   :  { %v2588_v39 = vsel %vm2527_vm1, %v7739_v16, 0.0 }
 0x448   :  { %2586 = vadd.xlane.f32.xlu1 %v2585_v9  ;;  %2589 = vadd.xlane.f32.xlu0 %v2588_v39 }
 0x449   :  { %v7745_v41 = vpop.eup %6790 }
 0x44a   :  { %v7747_v24 = vpop.eup %6792  ;;  %v2591_v2 = vsel %vm2527_vm1, %v7745_v41, 0.0 }
 0x44b   :  { %v2594_v12 = vsel %vm2527_vm1, %v7747_v24, 0.0 }
 0x44c   :  { %2592 = vadd.xlane.f32.xlu1 %v2591_v2  ;;  %2595 = vadd.xlane.f32.xlu0 %v2594_v12 }
 0x44d   :  { %v7753_v19 = vpop.eup %6794 }
 0x44e   :  { %v2597_v44 = vsel %vm2527_vm1, %v7753_v19, 0.0 }
 0x450   :  { %2598 = vadd.xlane.f32.xlu1 %v2597_v44 }
 0x4cc   :  { %v2578_v6 = vpop.xlane.xlu0 %2577 }
 0x4cd   :  { %6796 = vrcp.f32 %v2578_v6 }
 0x4d0   :  { %v2584_v11 = vpop.xlane.xlu0 %2583 }
 0x4d1   :  { %v2581_v18 = vpop.xlane.xlu1 %2580  ;;  %6798 = vrcp.f32 %v2584_v11 }
 0x4d2   :  { %6800 = vrcp.f32 %v2581_v18 }
 0x4d5   :  { %v2587_v30 = vpop.xlane.xlu1 %2586  ;;  %v2590_v31 = vpop.xlane.xlu0 %2589 }
 0x4d6   :  { %6802 = vrcp.f32 %v2587_v30 }
 0x4d7   :  { %v6797_v14 = vpop.eup %6796  ;;  %6804 = vrcp.f32 %v2590_v31 }
 0x4d8   :  { %v2601_v27 = vmul.f32 %v6797_v14, %v6781_v57 }
 0x4d9   :  { %v2593_v60 = vpop.xlane.xlu1 %2592  ;;  %v2596_v10 = vpop.xlane.xlu0 %2595 }
 0x4da   :  { %2616 = vst.msk [vmem:[%s8128_s13] sm:$0xff] %vm2527_vm1, %v2601_v27  ;;  %6806 = vrcp.f32 %v2593_v60  ;;  %v3546_v21 = vsel %vm2527_vm1, %v2601_v27, 0 }
 0x4db   :  { %v6799_v51 = vpop.eup %6798  ;;  %6808 = vrcp.f32 %v2596_v10  ;;  %v7780_v13 = vand.u32 4294901760, %v3546_v21 }
 0x4dc   :  { %v6801_v15 = vpop.eup %6800  ;;  %v2605_v54 = vmul.f32 %v6799_v51, %v6783_v1 }
 0x4dd   :  { %v2603_v61 = vmul.f32 %v6801_v15, %v6785_v47  ;;  %v2599_v55 = vpop.xlane.xlu1 %2598  ;;  %v7783_v37 = vsub.f32 %v3546_v21, %v7780_v13  ;;  %v7887_v15 = vpop.f32.mrb[8].mxu1 }
 0x4de   :  { %2618 = vst.msk [vmem:[%s8128_s13 + $0x10] sm:$0xff] %vm2527_vm1, %v2605_v54  ;;  %6810 = vrcp.f32 %v2599_v55  ;;  %v3552_v38 = vsel %vm2527_vm1, %v2605_v54, 0  ;;  %v7889_v54 = vpop.f32.mrb[9].mxu1 }
 0x4df   :  { %2617 = vst.msk [vmem:[%s8128_s13 + $0x8] sm:$0xff] %vm2527_vm1, %v2603_v61  ;;  %v3549_v34 = vsel %vm2527_vm1, %v2603_v61, 0  ;;  %v3641_v42 = vand.u32 4294901760, %v7783_v37  ;;  %v7796_v20 = vand.u32 4294901760, %v3552_v38 }
 0x4e0   :  { %v6803_v43 = vpop.eup %6802  ;;  %v7798_v17 = vand.u32 4294901760, %v3549_v34 }
 0x4e1   :  { %v6805_v48 = vpop.eup %6804  ;;  %v2607_v32 = vmul.f32 %v6803_v43, %v7737_v40  ;;  %v3642_v49 = vsub.f32 %v7783_v37, %v3641_v42  ;;  %v7805_v25 = vsub.f32 %v3552_v38, %v7796_v20 }
 0x4e2   :  { %v7808_v56 = vsub.f32 %v3549_v34, %v7798_v17  ;;  %v2609_v36 = vmul.f32 %v6805_v48, %v7739_v16 }
 0x4e3   :  { %2619 = vst.msk [vmem:[%s8128_s13 + $0x18] sm:$0xff] %vm2527_vm1, %v2607_v32  ;;  %v3643_v33 = vand.u32 4294901760, %v3642_v49  ;;  %v3661_v58 = vand.u32 4294901760, %v7805_v25  ;;  %v3555_v50 = vsel %vm2527_vm1, %v2607_v32, 0 }
 0x4e4   :  { %v6807_v26 = vpop.eup %6806  ;;  %2620 = vst.msk [vmem:[%s8128_s13 + $0x20] sm:$0xff] %vm2527_vm1, %v2609_v36  ;;  %v3651_v35 = vand.u32 4294901760, %v7808_v56  ;;  %v7822_v59 = vand.u32 4294901760, %v3555_v50  ;;  %v3558_v45 = vsel %vm2527_vm1, %v2609_v36, 0 }
 0x4e5   :  { %v6809_v57 = vpop.eup %6808  ;;  %v2611_v53 = vmul.f32 %v6807_v26, %v7745_v41  ;;  %6090 = vmatprep.mubr.f32.mxu0 %v3643_v33  ;;  %v3662_v0 = vsub.f32 %v7805_v25, %v3661_v58  ;;  %v7829_v46 = vand.u32 4294901760, %v3558_v45  ;;  %v5151_v26 = vld [vmem:[%s8130_s9] ss:$0 sm:$0xff] }
 0x4e6   :  { %v2613_v8 = vmul.f32 %v6809_v57, %v7747_v24  ;;  %v3652_v29 = vsub.f32 %v7808_v56, %v3651_v35  ;;  %v7836_v1 = vsub.f32 %v3555_v50, %v7822_v59  ;;  %v3496_v57 = vld [vmem:[%s8131_s2] sm:$0xff] }
 0x4e7   :  { %2621 = vst.msk [vmem:[%s8128_s13 + $0x28] sm:$0xff] %vm2527_vm1, %v2611_v53  ;;  %v3663_v7 = vand.u32 4294901760, %v3662_v0  ;;  %v7843_v47 = vsub.f32 %v3558_v45, %v7829_v46  ;;  %v3561_v62 = vsel %vm2527_vm1, %v2611_v53, 0  ;;  %v6533_v45 = vadd.f32 %v5151_v26, %v7889_v54 }
 0x4e8   :  { %v6811_v63 = vpop.eup %6810  ;;  %2622 = vst.msk [vmem:[%s8128_s13 + $0x30] sm:$0xff] %vm2527_vm1, %v2613_v8  ;;  %v3653_v40 = vand.u32 4294901760, %v3652_v29  ;;  %v3671_v16 = vand.u32 4294901760, %v7836_v1  ;;  %v7851_v9 = vand.u32 4294901760, %v3561_v62  ;;  %v3564_v39 = vsel %vm2527_vm1, %v2613_v8, 0  ;;  %v3499_v8 = vld [vmem:[%s8131_s2 + $0x18] sm:$0xff] }
 0x4e9   :  { %v2615_v41 = vmul.f32 %v6811_v63, %v7753_v19  ;;  %v3681_v24 = vand.u32 4294901760, %v7843_v47  ;;  %v7856_v2 = vand.u32 4294901760, %v3564_v39  ;;  %v3501_v63 = vld [vmem:[%s8131_s2 + $0x28] sm:$0xff] }
 0x4ea   :  { %6091 = vmatmul.mubr.f32.vlgmr.msra.gmra.mrb[16].mxu0 %v3653_v40  ;;  %v3672_v12 = vsub.f32 %v7836_v1, %v3671_v16  ;;  %v3690_v44 = vsub.f32 %v3561_v62, %v7851_v9 }
 0x4eb   :  { %2623 = vst.msk [vmem:[%s8128_s13 + $0x38] sm:$0xff] %vm2527_vm1, %v2615_v41  ;;  %6093 = vmatprep.mubr.f32.mxu0 %v3663_v7  ;;  %6103 = vmatpush3.msra.mxu0 %v7772_v3  ;;  %v3682_v19 = vsub.f32 %v7843_v47, %v3681_v24  ;;  %v3700_v22 = vsub.f32 %v3564_v39, %v7856_v2  ;;  %v3567_v4 = vsel %vm2527_vm1, %v2615_v41, 0  ;;  %v3500_v39 = vld [vmem:[%s8131_s2 + $0x20] sm:$0xff] }
 0x4ec   :  { %v3673_v52 = vand.u32 4294901760, %v3672_v12  ;;  %v3691_v6 = vand.u32 4294901760, %v3690_v44  ;;  %v7872_v11 = vand.u32 4294901760, %v3567_v4  ;;  %6116 = vmatprep.subr.mxu0 %v7765_v23 }
 0x4ed   :  { %v3683_v18 = vand.u32 4294901760, %v3682_v19  ;;  %v3701_v30 = vand.u32 4294901760, %v3700_v22  ;;  %v3503_v19 = vld [vmem:[%s8131_s2 + $0x38] sm:$0xff] }
 0x4ee   :  { %6094 = vmatmul.mubr.f32.gmra.mrb[18].mxu0 %v3673_v52  ;;  %v3692_v31 = vsub.f32 %v3690_v44, %v3691_v6  ;;  %v3710_v3 = vsub.f32 %v3567_v4, %v7872_v11  ;;  %v3502_v4 = vld [vmem:[%s8131_s2 + $0x30] sm:$0xff] }
 0x4ef   :  { %6096 = vmatprep.mubr.f32.mxu0 %v3683_v18  ;;  %v3702_v14 = vsub.f32 %v3700_v22, %v3701_v30 }
 0x4f0   :  { %v3693_v27 = vand.u32 4294901760, %v3692_v31  ;;  %v3711_v60 = vand.u32 4294901760, %v3710_v3 }
 0x4f1   :  { %v3703_v10 = vand.u32 4294901760, %v3702_v14 }
 0x4f2   :  { %6097 = vmatmul.mubr.f32.gmra.mrb[20].mxu0 %v3693_v27  ;;  %v3712_v21 = vsub.f32 %v3710_v3, %v3711_v60 }
 0x4f3   :  { %6099 = vmatprep.mubr.f32.mxu0 %v3703_v10 }
 0x4f4   :  { %v3713_v51 = vand.u32 4294901760, %v3712_v21 }
 0x4f6   :  { %6100 = vmatmul.mubr.f32.gmra.mrb[22].mxu0 %v3713_v51 }
 0x4f7   :  { %6104 = vmatprep.mubr.f32.mxu0 %v7780_v13 }
 0x4fa   :  { %6105 = vmatmul.mubr.f32.vlgmr.msra.gmra.mrb[16].mxu0 %v7798_v17 }
 0x4fb   :  { %6107 = vmatprep.mubr.f32.mxu0 %v7796_v20  ;;  %6117 = vmatpush3.msra.mxu0 %v7765_v23  ;;  %v7894_v23 = vpop.f32.mrb[10].mxu1 }
 0x4fc   :  { %6130 = vmatprep.subr.mxu0 %v7760_v5  ;;  %v7897_v61 = vpop.f32.mrb[11].mxu1  ;;  %v6534_v0 = vadd.f32 %v7894_v23, %v5151_v26 }
 0x4fd   :  { %v7901_v55 = vpop.f32.mrb[12].mxu1  ;;  %v6535_v29 = vadd.f32 %v5151_v26, %v7897_v61 }
 0x4fe   :  { %6108 = vmatmul.mubr.f32.gmra.mrb[18].mxu0 %v7822_v59  ;;  %v7903_v38 = vpop.f32.mrb[13].mxu1  ;;  %v6536_v7 = vadd.f32 %v7901_v55, %v5151_v26  ;;  %v3507_v62 = vmul.f32 %v6534_v0, %v3499_v8 }
 0x4ff   :  { %6110 = vmatprep.mubr.f32.mxu0 %v7829_v46  ;;  %v7905_v34 = vpop.f32.mrb[14].mxu1  ;;  %v6537_v40 = vadd.f32 %v5151_v26, %v7903_v38 }
 0x500   :  { %v7907_v43 = vpop.f32.mrb[15].mxu1  ;;  %v3509_v41 = vmul.f32 %v6536_v7, %v3501_v63  ;;  %v6538_v12 = vadd.f32 %v7905_v34, %v5151_v26 }
 0x502   :  { %6111 = vmatmul.mubr.f32.gmra.mrb[20].mxu0 %v7851_v9  ;;  %v3517_v52 = vmul.f32 0.5, %v3509_v41 }
 0x503   :  { %6113 = vmatprep.mubr.f32.mxu0 %v7856_v2 }
 0x506   :  { %6114 = vmatmul.mubr.f32.gmra.mrb[22].mxu0 %v7872_v11 }
 0x507   :  { %6118 = vmatprep.mubr.f32.mxu0 %v7783_v37 }
 0x50a   :  { %6119 = vmatmul.mubr.f32.vlgmr.msra.gmra.mrb[16].mxu0 %v7808_v56 }
 0x50b   :  { %6121 = vmatprep.mubr.f32.mxu0 %v7805_v25  ;;  %6131 = vmatpush3.msra.mxu0 %v7760_v5 }
 0x50c   :  { %6144 = vmatprep.subr.mxu0 %v7768_v28 }
 0x50e   :  { %6122 = vmatmul.mubr.f32.gmra.mrb[18].mxu0 %v7836_v1  ;;  %v3498_v1 = vld [vmem:[%s8131_s2 + $0x10] sm:$0xff] }
 0x50f   :  { %6124 = vmatprep.mubr.f32.mxu0 %v7843_v47 }
 0x512   :  { %6125 = vmatmul.mubr.f32.gmra.mrb[20].mxu0 %v3690_v44 }
 0x513   :  { %6127 = vmatprep.mubr.f32.mxu0 %v3700_v22  ;;  %v6539_v22 = vadd.f32 %v5151_v26, %v7907_v43 }
 0x515   :  { %v3510_v18 = vmul.f32 %v6539_v22, %v3502_v4 }
 0x516   :  { %6128 = vmatmul.mubr.f32.gmra.mrb[22].mxu0 %v3710_v3 }
 0x517   :  { %6132 = vmatprep.mubr.f32.mxu0 %v3641_v42  ;;  %v3518_v31 = vmul.f32 0.5, %v3510_v18 }
 0x51a   :  { %6133 = vmatmul.mubr.f32.vlgmr.msra.gmra.mrb[16].mxu0 %v3651_v35  ;;  %v6532_v35 = vadd.f32 %v7887_v15, %v5151_v26 }
 0x51b   :  { %6135 = vmatprep.mubr.f32.mxu0 %v3661_v58  ;;  %6145 = vmatpush3.msra.mxu0 %v7768_v28  ;;  %v4329_v28 = vld [vmem:[%s8129_s11 + $0x8] sm:$0xff] }
 0x51c   :  { %6158 = vmatprep.subr.mxu0 %v7760_v5  ;;  %v4359_v37 = vand.u32 4294901760, %v4329_v28 }
 0x51e   :  { %6136 = vmatmul.mubr.f32.gmra.mrb[18].mxu0 %v3671_v16 }
 0x51f   :  { %6138 = vmatprep.mubr.f32.mxu0 %v3681_v24  ;;  %v3515_v24 = vmul.f32 0.5, %v3507_v62 }
 0x522   :  { %6139 = vmatmul.mubr.f32.gmra.mrb[20].mxu0 %v3691_v6 }
 0x523   :  { %6141 = vmatprep.mubr.f32.mxu0 %v3701_v30 }
 0x526   :  { %6142 = vmatmul.mubr.f32.gmra.mrb[22].mxu0 %v3711_v60 }
 0x527   :  { %6146 = vmatprep.mubr.f32.mxu0 %v7780_v13 }
 0x52a   :  { %6147 = vmatmul.mubr.f32.vlgmr.msra.gmra.mrb[16].mxu0 %v7798_v17 }
 0x52b   :  { %6149 = vmatprep.mubr.f32.mxu0 %v7796_v20  ;;  %6159 = vmatpush3.msra.mxu0 %v7760_v5  ;;  %v4328_v5 = vld [vmem:[%s8129_s11] sm:$0xff] }
 0x52e   :  { %6150 = vmatmul.mubr.f32.gmra.mrb[18].mxu0 %v7822_v59 }
 0x52f   :  { %6152 = vmatprep.mubr.f32.mxu0 %v7829_v46 }
 0x532   :  { %6153 = vmatmul.mubr.f32.gmra.mrb[20].mxu0 %v7851_v9 }
 0x533   :  { %6155 = vmatprep.mubr.f32.mxu0 %v7856_v2 }
 0x536   :  { %6156 = vmatmul.mubr.f32.gmra.mrb[22].mxu0 %v7872_v11 }
 0x537   :  { %6160 = vmatprep.mubr.f32.mxu0 %v7780_v13  ;;  %v4356_v13 = vand.u32 4294901760, %v4328_v5 }
 0x539   :  { %v7944_v42 = vpack.c.bf16 %v4359_v37, %v4356_v13 }
 0x53a   :  { %6161 = vmatmul.mubr.f32.vlgmr.msra.gmra.mrb[16].mxu0 %v7798_v17  ;;  %v4511_v17 = vsub.f32 %v4329_v28, %v4359_v37 }
 0x53b   :  { %6163 = vmatprep.mubr.f32.mxu0 %v7796_v20  ;;  %6485 = vmatprep.subr.bf16.mxu1 %v7944_v42  ;;  %v4504_v20 = vsub.f32 %v4328_v5, %v4356_v13 }
 0x53c   :  { %6487 = vmatpush3.bf16.msra.mxu1 %v7944_v42  ;;  %v4512_v32 = vand.u32 4294901760, %v4511_v17 }
 0x53d   :  { %v4505_v48 = vand.u32 4294901760, %v4504_v20  ;;  %v7951_v58 = vpack.c.bf16 %v4511_v17, %v4504_v20 }
 0x53e   :  { %6164 = vmatmul.mubr.f32.gmra.mrb[18].mxu0 %v7822_v59  ;;  %v4513_v25 = vsub.f32 %v4511_v17, %v4512_v32  ;;  %v3497_v59 = vld [vmem:[%s8131_s2 + $0x8] sm:$0xff] }
 0x53f   :  { %6166 = vmatprep.mubr.f32.mxu0 %v7829_v46  ;;  %v4506_v49 = vsub.f32 %v4504_v20, %v4505_v48  ;;  %v7953_v50 = vpack.c.bf16 %v4512_v32, %v4505_v48  ;;  %v3505_v53 = vmul.f32 %v6532_v35, %v3497_v59  ;;  %v3504_v46 = vmul.f32 %v6533_v45, %v3496_v57 }
 0x540   :  { %v4514_v36 = vand.u32 4294901760, %v4513_v25 }
 0x541   :  { %v4507_v56 = vand.u32 4294901760, %v4506_v49  ;;  %v3513_v47 = vmul.f32 0.5, %v3505_v53  ;;  %v3512_v16 = vmul.f32 0.5, %v3504_v46 }
 0x542   :  { %6167 = vmatmul.mubr.f32.gmra.mrb[20].mxu0 %v7851_v9  ;;  %v3506_v9 = vmul.f32 %v6535_v29, %v3498_v1 }
 0x543   :  { %6169 = vmatprep.mubr.f32.mxu0 %v7856_v2  ;;  %v7948_v33 = vpack.c.bf16 %v4514_v36, %v4507_v56  ;;  %6812 = vtanh.f32 %v3513_v47  ;;  %v3508_v2 = vmul.f32 %v6537_v40, %v3500_v39 }
 0x544   :  { %6814 = vtanh.f32 %v3512_v16  ;;  %v3514_v44 = vmul.f32 0.5, %v3506_v9 }
 0x545   :  { %6489 = vmatprep.subr.bf16.mxu1 %v7948_v33  ;;  %6816 = vtanh.f32 %v3515_v24  ;;  %v3516_v6 = vmul.f32 0.5, %v3508_v2 }
 0x546   :  { %6170 = vmatmul.mubr.f32.gmra.mrb[22].mxu0 %v7872_v11  ;;  %v3511_v11 = vmul.f32 %v6538_v12, %v3503_v19  ;;  %6818 = vtanh.f32 %v3514_v44 }
 0x547   :  { %6820 = vtanh.f32 %v3517_v52 }
 0x548   :  { %6822 = vtanh.f32 %v3516_v6  ;;  %v3519_v30 = vmul.f32 0.5, %v3511_v11 }
 0x54a   :  { %6824 = vtanh.f32 %v3519_v30 }
 0x54b   :  { %6826 = vtanh.f32 %v3518_v31 }
 0x54d   :  { %v6813_v3 = vpop.eup %6812 }
 0x54e   :  { %v6815_v14 = vpop.eup %6814  ;;  %v3529_v27 = vmul.f32 0.5, %v6813_v3 }
 0x54f   :  { %v6817_v60 = vpop.eup %6816  ;;  %v3528_v10 = vmul.f32 0.5, %v6815_v14 }
 0x550   :  { %v6819_v21 = vpop.eup %6818  ;;  %v3537_v15 = vadd.f32 0.5, %v3529_v27  ;;  %v3531_v54 = vmul.f32 0.5, %v6817_v60 }
 0x551   :  { %v6821_v51 = vpop.eup %6820  ;;  %v3536_v55 = vadd.f32 0.5, %v3528_v10  ;;  %v3530_v38 = vmul.f32 0.5, %v6819_v21 }
 0x552   :  { %v6823_v23 = vpop.eup %6822  ;;  %v3533_v28 = vmul.f32 0.5, %v6821_v51  ;;  %v3539_v37 = vadd.f32 0.5, %v3531_v54 }
 0x553   :  { %v3532_v20 = vmul.f32 0.5, %v6823_v23  ;;  %v3538_v25 = vadd.f32 0.5, %v3530_v38 }
 0x554   :  { %v6825_v17 = vpop.eup %6824  ;;  %v3541_v57 = vadd.f32 0.5, %v3533_v28 }
 0x555   :  { %v6827_v56 = vpop.eup %6826  ;;  %v3540_v46 = vadd.f32 0.5, %v3532_v20  ;;  %v3535_v8 = vmul.f32 0.5, %v6825_v17 }
 0x556   :  { %v3534_v62 = vmul.f32 0.5, %v6827_v56 }
 0x557   :  { %v3543_v44 = vadd.f32 0.5, %v3535_v8 }
 0x558   :  { %v3542_v6 = vadd.f32 0.5, %v3534_v62 }
 0x60d   :  { %v6162_v61 = vpop.f32.mrb[16].mxu0 }
 0x60e   :  { %v4321_v34 = vmul.f32 %v6162_v61, %v3537_v15  ;;  %v4274_v43 = vpop.f32.mrb[17].mxu0 }
 0x60f   :  { %v4320_v5 = vmul.f32 %v4274_v43, %v3536_v55 }
 0x610   :  { %v4335_v13 = vsel %vm4330_vm4, %v4321_v34, 0 }
 0x611   :  { %v7991_v48 = vand.u32 4294901760, %v4335_v13  ;;  %v4332_v32 = vsel %vm4330_vm4, %v4320_v5, 0  ;;  %v6165_v49 = vpop.f32.mrb[18].mxu0 }
 0x612   :  { %v7994_v36 = vand.u32 4294901760, %v4332_v32  ;;  %v4323_v26 = vmul.f32 %v6165_v49, %v3539_v37  ;;  %v4286_v35 = vpop.f32.mrb[19].mxu0 }
 0x613   :  { %v7997_v59 = vsub.f32 %v4335_v13, %v7991_v48  ;;  %v4322_v45 = vmul.f32 %v4286_v35, %v3538_v25 }
 0x614   :  { %v8000_v53 = vsub.f32 %v4332_v32, %v7994_v36  ;;  %v4341_v0 = vsel %vm4330_vm4, %v4323_v26, 0 }
 0x615   :  { %v4434_v29 = vand.u32 4294901760, %v7997_v59  ;;  %v8004_v1 = vand.u32 4294901760, %v4341_v0  ;;  %v4338_v7 = vsel %vm4330_vm4, %v4322_v45, 0  ;;  %v6168_v47 = vpop.f32.mrb[20].mxu0 }
 0x616   :  { %v8007_v63 = vand.u32 4294901760, %v4338_v7  ;;  %v4325_v40 = vmul.f32 %v6168_v47, %v3541_v57  ;;  %v4298_v16 = vpop.f32.mrb[21].mxu0  ;;  %v4424_v9 = vand.u32 4294901760, %v8000_v53 }
 0x617   :  { %v4435_v39 = vsub.f32 %v7997_v59, %v4434_v29  ;;  %v8014_v41 = vsub.f32 %v4341_v0, %v8004_v1  ;;  %v4324_v24 = vmul.f32 %v4298_v16, %v3540_v46 }
 0x618   :  { %v8017_v2 = vsub.f32 %v4338_v7, %v8007_v63  ;;  %v4347_v12 = vsel %vm4330_vm4, %v4325_v40, 0  ;;  %v4425_v19 = vsub.f32 %v8000_v53, %v4424_v9 }
 0x619   :  { %v8023_v22 = vand.u32 4294901760, %v4347_v12  ;;  %v4344_v4 = vsel %vm4330_vm4, %v4324_v24, 0  ;;  %v6171_v52 = vpop.f32.mrb[22].mxu0  ;;  %v4454_v11 = vand.u32 4294901760, %v8014_v41  ;;  %v4436_v27 = vand.u32 4294901760, %v4435_v39 }
 0x61a   :  { %v8027_v18 = vand.u32 4294901760, %v4344_v4  ;;  %v4327_v30 = vmul.f32 %v6171_v52, %v3543_v44  ;;  %v4310_v31 = vpop.f32.mrb[23].mxu0  ;;  %v4426_v3 = vand.u32 4294901760, %v4425_v19  ;;  %v4444_v14 = vand.u32 4294901760, %v8017_v2 }
 0x61b   :  { %v4473_v60 = vsub.f32 %v4347_v12, %v8023_v22  ;;  %v4326_v10 = vmul.f32 %v4310_v31, %v3542_v6  ;;  %v4455_v21 = vsub.f32 %v8014_v41, %v4454_v11 }
 0x61c   :  { %v4463_v51 = vsub.f32 %v4344_v4, %v8027_v18  ;;  %v4353_v15 = vsel %vm4330_vm4, %v4327_v30, 0  ;;  %6176 = vmatprep.mubr.f32.mxu1 %v4426_v3  ;;  %v4445_v54 = vsub.f32 %v8017_v2, %v4444_v14 }
 0x61d   :  { %v8037_v23 = vand.u32 4294901760, %v4353_v15  ;;  %v4350_v61 = vsel %vm4330_vm4, %v4326_v10, 0  ;;  %6177 = vmatmul.mubr.f32.vlgmr.msra.gmra.mrb[16].mxu1 %v4436_v27  ;;  %v4474_v55 = vand.u32 4294901760, %v4473_v60  ;;  %v4456_v28 = vand.u32 4294901760, %v4455_v21 }
 0x61e   :  { %v8040_v38 = vand.u32 4294901760, %v4350_v61  ;;  %6491 = vmatpush3.bf16.msra.mxu1 %v7948_v33  ;;  %v4446_v34 = vand.u32 4294901760, %v4445_v54  ;;  %v4464_v43 = vand.u32 4294901760, %v4463_v51 }
 0x61f   :  { %v4493_v5 = vsub.f32 %v4353_v15, %v8037_v23  ;;  %v4475_v13 = vsub.f32 %v4473_v60, %v4474_v55  ;;  %6493 = vmatprep.subr.bf16.mxu1 %v7951_v58 }
 0x620   :  { %v4483_v37 = vsub.f32 %v4350_v61, %v8040_v38  ;;  %6179 = vmatprep.mubr.f32.mxu1 %v4446_v34  ;;  %v4465_v20 = vsub.f32 %v4463_v51, %v4464_v43 }
 0x621   :  { %6180 = vmatmul.mubr.f32.gmra.mrb[18].mxu1 %v4456_v28  ;;  %v4494_v17 = vand.u32 4294901760, %v4493_v5  ;;  %v4476_v25 = vand.u32 4294901760, %v4475_v13 }
 0x622   :  { %v4466_v32 = vand.u32 4294901760, %v4465_v20  ;;  %v4484_v49 = vand.u32 4294901760, %v4483_v37 }
 0x623   :  { %v4495_v56 = vsub.f32 %v4493_v5, %v4494_v17 }
 0x624   :  { %6182 = vmatprep.mubr.f32.mxu1 %v4466_v32  ;;  %v4485_v33 = vsub.f32 %v4483_v37, %v4484_v49 }
 0x625   :  { %6183 = vmatmul.mubr.f32.gmra.mrb[20].mxu1 %v4476_v25  ;;  %v4496_v35 = vand.u32 4294901760, %v4495_v56 }
 0x626   :  { %v4486_v26 = vand.u32 4294901760, %v4485_v33 }
 0x628   :  { %6185 = vmatprep.mubr.f32.mxu1 %v4486_v26 }
 0x629   :  { %6186 = vmatmul.mubr.f32.gmra.mrb[22].mxu1 %v4496_v35 }
 0x62a   :  { %6192 = vmatprep.mubr.f32.mxu1 %v7994_v36 }
 0x62d   :  { %6193 = vmatmul.mubr.f32.vlgmr.msra.gmra.mrb[16].mxu1 %v7991_v48 }
 0x62e   :  { %6195 = vmatprep.mubr.f32.mxu1 %v8007_v63  ;;  %6495 = vmatpush3.bf16.msra.mxu1 %v7951_v58 }
 0x62f   :  { %6497 = vmatprep.subr.bf16.mxu1 %v7944_v42 }
 0x631   :  { %6196 = vmatmul.mubr.f32.gmra.mrb[18].mxu1 %v8004_v1 }
 0x632   :  { %6198 = vmatprep.mubr.f32.mxu1 %v8027_v18 }
 0x635   :  { %6199 = vmatmul.mubr.f32.gmra.mrb[20].mxu1 %v8023_v22 }
 0x636   :  { %6201 = vmatprep.mubr.f32.mxu1 %v8040_v38 }
 0x639   :  { %6202 = vmatmul.mubr.f32.gmra.mrb[22].mxu1 %v8037_v23 }
 0x63a   :  { %6208 = vmatprep.mubr.f32.mxu1 %v8000_v53 }
 0x63d   :  { %6209 = vmatmul.mubr.f32.vlgmr.msra.gmra.mrb[16].mxu1 %v7997_v59 }
 0x63e   :  { %6211 = vmatprep.mubr.f32.mxu1 %v8017_v2  ;;  %6499 = vmatpush3.bf16.msra.mxu1 %v7944_v42 }
 0x63f   :  { %6501 = vmatprep.subr.bf16.mxu1 %v7953_v50 }
 0x641   :  { %6212 = vmatmul.mubr.f32.gmra.mrb[18].mxu1 %v8014_v41 }
 0x642   :  { %6214 = vmatprep.mubr.f32.mxu1 %v4463_v51 }
 0x645   :  { %6215 = vmatmul.mubr.f32.gmra.mrb[20].mxu1 %v4473_v60 }
 0x646   :  { %6217 = vmatprep.mubr.f32.mxu1 %v4483_v37 }
 0x649   :  { %6218 = vmatmul.mubr.f32.gmra.mrb[22].mxu1 %v4493_v5 }
 0x64a   :  { %6224 = vmatprep.mubr.f32.mxu1 %v4424_v9 }
 0x64d   :  { %6225 = vmatmul.mubr.f32.vlgmr.msra.gmra.mrb[16].mxu1 %v4434_v29 }
 0x64e   :  { %6227 = vmatprep.mubr.f32.mxu1 %v4444_v14  ;;  %6503 = vmatpush3.bf16.msra.mxu1 %v7953_v50 }
 0x64f   :  { %6505 = vmatprep.subr.bf16.mxu1 %v7944_v42 }
 0x651   :  { %6228 = vmatmul.mubr.f32.gmra.mrb[18].mxu1 %v4454_v11 }
 0x652   :  { %6230 = vmatprep.mubr.f32.mxu1 %v4464_v43 }
 0x655   :  { %6231 = vmatmul.mubr.f32.gmra.mrb[20].mxu1 %v4474_v55 }
 0x656   :  { %6233 = vmatprep.mubr.f32.mxu1 %v4484_v49 }
 0x659   :  { %6234 = vmatmul.mubr.f32.gmra.mrb[22].mxu1 %v4494_v17 }
 0x65a   :  { %6240 = vmatprep.mubr.f32.mxu1 %v7994_v36 }
 0x65d   :  { %6241 = vmatmul.mubr.f32.vlgmr.msra.gmra.mrb[16].mxu1 %v7991_v48 }
 0x65e   :  { %6243 = vmatprep.mubr.f32.mxu1 %v8007_v63  ;;  %6507 = vmatpush3.bf16.msra.mxu1 %v7944_v42 }
 0x661   :  { %6244 = vmatmul.mubr.f32.gmra.mrb[18].mxu1 %v8004_v1 }
 0x662   :  { %6246 = vmatprep.mubr.f32.mxu1 %v8027_v18 }
 0x665   :  { %6247 = vmatmul.mubr.f32.gmra.mrb[20].mxu1 %v8023_v22 }
 0x666   :  { %6249 = vmatprep.mubr.f32.mxu1 %v8040_v38 }
 0x669   :  { %6250 = vmatmul.mubr.f32.gmra.mrb[22].mxu1 %v8037_v23 }
 0x66a   :  { %6256 = vmatprep.mubr.f32.mxu1 %v7994_v36 }
 0x66d   :  { %6257 = vmatmul.mubr.f32.vlgmr.msra.gmra.mrb[16].mxu1 %v7991_v48 }
 0x66e   :  { %6259 = vmatprep.mubr.f32.mxu1 %v8007_v63 }
 0x671   :  { %6260 = vmatmul.mubr.f32.gmra.mrb[18].mxu1 %v8004_v1 }
 0x672   :  { %6262 = vmatprep.mubr.f32.mxu1 %v8027_v18 }
 0x675   :  { %6263 = vmatmul.mubr.f32.gmra.mrb[20].mxu1 %v8023_v22 }
 0x676   :  { %6265 = vmatprep.mubr.f32.mxu1 %v8040_v38 }
 0x679   :  { %6266 = vmatmul.mubr.f32.gmra.mrb[22].mxu1 %v8037_v23 }
 0x740   :  { %v6258_v42 = vpop.f32.mrb[16].mxu1 }
 0x741   :  { %v5116_v58 = vmax.f32 %v6258_v42, 1e-07  ;;  %v5069_v50 = vpop.f32.mrb[17].mxu1 }
 0x742   :  { %v5115_v59 = vmax.f32 %v5069_v50, 1e-07 }
 0x743   :  { %v5124_v36 = vmin.f32 %v5116_v58, 0.9999999 }
 0x744   :  { %v5123_v45 = vmin.f32 %v5115_v59, 0.9999999  ;;  %v6261_v48 = vpop.f32.mrb[18].mxu1 }
 0x745   :  { %5133 = vst.msk [vmem:[%s8132_s12 + $0x8] sm:$0xff] %vm5131_vm5, %v5124_v36  ;;  %v5118_v57 = vmax.f32 %v6261_v48, 1e-07  ;;  %v5081_v53 = vpop.f32.mrb[19].mxu1 }
 0x746   :  { %5132 = vst.msk [vmem:[%s8132_s12] sm:$0xff] %vm5131_vm5, %v5123_v45  ;;  %v5117_v0 = vmax.f32 %v5081_v53, 1e-07 }
 0x747   :  { %v5126_v46 = vmin.f32 %v5118_v57, 0.9999999 }
 0x748   :  { %v5125_v8 = vmin.f32 %v5117_v0, 0.9999999  ;;  %v6264_v29 = vpop.f32.mrb[20].mxu1 }
 0x749   :  { %5135 = vst.msk [vmem:[%s8132_s12 + $0x18] sm:$0xff] %vm5131_vm5, %v5126_v46  ;;  %v5120_v1 = vmax.f32 %v6264_v29, 1e-07  ;;  %v5093_v7 = vpop.f32.mrb[21].mxu1 }
 0x74a   :  { %5134 = vst.msk [vmem:[%s8132_s12 + $0x10] sm:$0xff] %vm5131_vm5, %v5125_v8  ;;  %v5119_v47 = vmax.f32 %v5093_v7, 1e-07 }
 0x74b   :  { %v5128_v62 = vmin.f32 %v5120_v1, 0.9999999 }
 0x74c   :  { %v5127_v63 = vmin.f32 %v5119_v47, 0.9999999  ;;  %v6267_v40 = vpop.f32.mrb[22].mxu1 }
 0x74d   :  { %5137 = vst.msk [vmem:[%s8132_s12 + $0x28] sm:$0xff] %vm5131_vm5, %v5128_v62  ;;  %v5122_v16 = vmax.f32 %v6267_v40, 1e-07  ;;  %v5105_v9 = vpop.f32.mrb[23].mxu1 }
 0x74e   :  { %5136 = vst.msk [vmem:[%s8132_s12 + $0x20] sm:$0xff] %vm5131_vm5, %v5127_v63  ;;  %v5121_v39 = vmax.f32 %v5105_v9, 1e-07 }
 0x74f   :  { %v5130_v41 = vmin.f32 %v5122_v16, 0.9999999 }
 0x750   :  { %v5129_v24 = vmin.f32 %v5121_v39, 0.9999999 }
 0x751   :  { %5139 = vst.msk [vmem:[%s8132_s12 + $0x38] sm:$0xff] %vm5131_vm5, %v5130_v41 }
 0x752   :  { %5138 = vst.msk [vmem:[%s8132_s12 + $0x30] sm:$0xff] %vm5131_vm5, %v5129_v24 }

</bundles_post_ra>
